<compile_context>
chip_gen: v6e
topology: v6e:2x2x1
jax: 0.10.0
libtpu: 0.0.40
codegen_flags: <defaults>
</compile_context>

<pallas_src>
import math
import functools

import jax
import jax.numpy as jnp
from jax import lax
from jax.experimental import pallas as pl
from jax.experimental.pallas import tpu as pltpu


def _layer_norm(t, g, b, eps=1e-5):
    """Single-pass LayerNorm over the last axis: var = E[t^2] - E[t]^2."""
    mu = jnp.mean(t, axis=-1, keepdims=True)
    ms = jnp.mean(t * t, axis=-1, keepdims=True)
    return (t - mu) * lax.rsqrt(ms - mu * mu + eps) * g + b


def _encoder_layer_kernel(
    x_ref,          # (S, D) f32 fast path, or (1, S, D) f32 fallback path
    wqkv_ref,       # (D, 3D) bf16  -- fused Q/K/V weight, Q columns pre-scaled
    bqkv_ref,       # (1, 3D) f32   -- fused Q/K/V bias, Q part pre-scaled
    wo_ref,         # (D, D)  bf16  -- attention out-projection weight
    w1_ref,         # (D, F)  bf16
    b1_ref,         # (1, F)  f32
    w2_ref,         # (F, D)  bf16
    vec_ref,        # (6, D)  f32   -- rows: [bo, b2, g1, be1, g2, be2]
    out_ref,        # same block shape as x_ref, f32
    *, n_heads, ffn_tile,
):
    D = wqkv_ref.shape[0]
    F = w1_ref.shape[1]
    dh = D // n_heads

    x = x_ref[...].reshape(-1, D)                 # (S, D) f32 (leading-1 squeeze is free)
    S = x.shape[0]

    bo = vec_ref[0:1, :]
    b2 = vec_ref[1:2, :]
    g1 = vec_ref[2:3, :]
    be1 = vec_ref[3:4, :]
    g2 = vec_ref[4:5, :]
    be2 = vec_ref[5:6, :]

    # --- fused Q/K/V in-projection: one bf16 MXU matmul, f32 accumulation.
    # The 1/sqrt(dh) scale is already folded into the Q columns (wrapper).
    qkv = jnp.dot(x.astype(jnp.bfloat16), wqkv_ref[...],
                  preferred_element_type=jnp.float32) + bqkv_ref[...]
    qkv_bf = qkv.astype(jnp.bfloat16)             # (S, 3D)

    # --- multi-head self attention with the out-projection folded into the
    # head loop:  attn = sum_h softmax(q_h k_h^T) v_h @ wo[h*dh:(h+1)*dh, :].
    # No scratch slab and no lane-partial stores; the f32 accumulator is a
    # plain value.  Head-column loads are lane-aligned when dh % 128 == 0.
    # TODO(synk): for large n_heads / S, move heads onto a grid axis (or a
    # fori_loop) so live ranges of the (S,S) score tiles stay bounded.
    attn = jnp.zeros((S, D), jnp.float32)
    for h in range(n_heads):                      # static unrolled loop
        lo = h * dh
        qh = qkv_bf[:, lo:lo + dh]
        kh = qkv_bf[:, D + lo:D + lo + dh]
        vh = qkv_bf[:, 2 * D + lo:2 * D + lo + dh]
        # q @ k^T via an NT dot_general (no materialized K transpose).
        s = lax.dot_general(qh, kh, (((1,), (1,)), ((), ())),
                            preferred_element_type=jnp.float32)
        s = s - jnp.max(s, axis=-1, keepdims=True)
        p = jnp.exp(s)
        p = p * pl.reciprocal(jnp.sum(p, axis=-1, keepdims=True), approx=True)
        oh = jnp.dot(p.astype(jnp.bfloat16), vh,
                     preferred_element_type=jnp.float32).astype(jnp.bfloat16)
        attn = attn + jnp.dot(oh, wo_ref[lo:lo + dh, :],
                              preferred_element_type=jnp.float32)

    # --- residual + LayerNorm 1 (single-pass reductions) ---
    y = _layer_norm(x + attn + bo, g1, be1)

    # --- feed forward: tile the hidden (F) dimension so the (S, F) ReLU
    # intermediate is never fully materialized; accumulate into (S, D) f32.
    y_bf = y.astype(jnp.bfloat16)
    ff = jnp.zeros((S, D), jnp.float32)
    for f0 in range(0, F, ffn_tile):              # static unrolled loop
        f1 = min(f0 + ffn_tile, F)
        h1 = jnp.dot(y_bf, w1_ref[:, f0:f1],
                     preferred_element_type=jnp.float32) + b1_ref[:, f0:f1]
        h1 = jnp.maximum(h1, 0.0)                 # ReLU (dropout = identity in eval)
        ff = ff + jnp.dot(h1.astype(jnp.bfloat16), w2_ref[f0:f1, :],
                          preferred_element_type=jnp.float32)

    # --- residual + LayerNorm 2 ---
    out_ref[...] = _layer_norm(y + ff + b2, g2, be2).reshape(out_ref.shape)


def _vmem_budget_bytes(S, D, F, ffn_tile):
    weights = 2 * (3 * D * D + D * D + 2 * D * F) + 4 * (3 * D + F + 6 * D)
    io_blocks = 2 * 2 * S * D * 4                 # double-buffered in/out f32 blocks
    inter = 4 * S * (3 * D + 4 * D + ffn_tile) + 4 * S * S
    budget = 2 * (weights + io_blocks + inter)    # 2x headroom
    # Cap at 56 MiB so the same budget is safe on v7x's 64 MiB physical VMEM;
    # on v5e/v6e (128 MiB) this can be raised toward ~100 MiB for large shapes.
    return int(min(max(budget, 32 << 20), 56 << 20))


def transformer_encoder_layer(src, params, n_heads):
    """src: [seq_len, batch, d_model] float32; returns the same shape (eval mode)."""
    S, B, D = src.shape
    F = params["w1"].shape[1]
    dh = D // n_heads
    scale = 1.0 / math.sqrt(dh)
    ffn_tile = min(F, 512)

    # Fuse the in-projection (with the attention scale folded into Q) and pack
    # the small per-channel vectors into one resident operand.
    wqkv = jnp.concatenate([params["wq"] * scale, params["wk"], params["wv"]], axis=1)
    bqkv = jnp.concatenate([params["bq"] * scale, params["bk"], params["bv"]], axis=1)
    vecs = jnp.concatenate([params["bo"], params["b2"], params["g1"],
                            params["be1"], params["g2"], params["be2"]], axis=0)

    bf16 = jnp.bfloat16
    # Grid-invariant operands: whole-array VMEM residency (single copy, no
    # per-grid-step DMA / double buffering).
    resident = pl.BlockSpec(memory_space=pltpu.MemorySpace.VMEM)
    weight_specs = [resident] * 7
    weight_args = (
        wqkv.astype(bf16), bqkv.astype(jnp.float32),
        params["wo"].astype(bf16),
        params["w1"].astype(bf16), params["b1"].astype(jnp.float32),
        params["w2"].astype(bf16),
        vecs.astype(jnp.float32),
    )

    kernel = functools.partial(_encoder_layer_kernel,
                               n_heads=n_heads, ffn_tile=ffn_tile)
    compiler_params = pltpu.CompilerParams(
        dimension_semantics=("parallel",),
        vmem_limit_bytes=_vmem_budget_bytes(S, D, F, ffn_tile),
    )

    if D % 128 == 0:
        # Fast path: no HBM transpose.  (S, B, D) -> (S, B*D) is a free
        # contiguous view; each batch element is a lane-aligned (S, D) column
        # block with contiguous D*4-byte rows (efficient strided DMA).
        x2 = src.reshape(S, B * D)
        out = pl.pallas_call(
            kernel,
            out_shape=jax.ShapeDtypeStruct((S, B * D), jnp.float32),
            grid=(B,),
            in_specs=[pl.BlockSpec((S, D), lambda b: (0, b))] + weight_specs,
            out_specs=pl.BlockSpec((S, D), lambda b: (0, b)),
            compiler_params=compiler_params,
        )(x2, *weight_args)
        return out.reshape(S, B, D)

    # TODO(synk): d_model not a multiple of 128 falls back to a batch-major
    # transpose (two extra HBM activation passes); a padded-D fast path would
    # remove this.
    xb = jnp.transpose(src, (1, 0, 2))            # (B, S, D)
    out = pl.pallas_call(
        kernel,
        out_shape=jax.ShapeDtypeStruct((B, S, D), jnp.float32),
        grid=(B,),
        in_specs=[pl.BlockSpec((1, S, D), lambda b: (b, 0, 0))] + weight_specs,
        out_specs=pl.BlockSpec((1, S, D), lambda b: (b, 0, 0)),
        compiler_params=compiler_params,
    )(xb, *weight_args)
    return jnp.transpose(out, (1, 0, 2))


def _reference(src, params, n_heads):
    """Pure-JAX f32 reference mirroring torch.nn.MultiheadAttention + layer norms."""
    S, B, D = src.shape
    dh = D // n_heads
    x = jnp.transpose(src, (1, 0, 2))
    q = x @ params["wq"] + params["bq"]
    k = x @ params["wk"] + params["bk"]
    v = x @ params["wv"] + params["bv"]

    def split(t):  # (B,S,D) -> (B,H,S,dh)
        return jnp.transpose(t.reshape(B, S, n_heads, dh), (0, 2, 1, 3))

    qh, kh, vh = split(q), split(k), split(v)
    s = jnp.einsum("bhqd,bhkd->bhqk", qh, kh) / math.sqrt(dh)
    p = jax.nn.softmax(s, axis=-1)
    o = jnp.einsum("bhqk,bhkd->bhqd", p, vh)
    o = jnp.transpose(o, (0, 2, 1, 3)).reshape(B, S, D)
    attn = o @ params["wo"] + params["bo"]

    def ln(t, g, b):
        mu = jnp.mean(t, axis=-1, keepdims=True)
        var = jnp.mean((t - mu) ** 2, axis=-1, keepdims=True)
        return (t - mu) * lax.rsqrt(var + 1e-5) * g + b

    y = ln(x + attn, params["g1"], params["be1"])
    ff = jnp.maximum(y @ params["w1"] + params["b1"], 0.0) @ params["w2"] + params["b2"]
    z = ln(y + ff, params["g2"], params["be2"])
    return jnp.transpose(z, (1, 0, 2))


def make_params(key, d_model, d_ff):
    ks = jax.random.split(key, 10)
    sc = 1.0 / math.sqrt(d_model)
    scf = 1.0 / math.sqrt(d_ff)
    return {
        # attention in-proj (stored pre-transposed: (in, out))
        "wq": jax.random.uniform(ks[0], (d_model, d_model), jnp.float32, -sc, sc),
        "wk": jax.random.uniform(ks[1], (d_model, d_model), jnp.float32, -sc, sc),
        "wv": jax.random.uniform(ks[2], (d_model, d_model), jnp.float32, -sc, sc),
        "bq": jax.random.uniform(ks[3], (1, d_model), jnp.float32, -sc, sc),
        "bk": jax.random.uniform(ks[4], (1, d_model), jnp.float32, -sc, sc),
        "bv": jax.random.uniform(ks[5], (1, d_model), jnp.float32, -sc, sc),
        # attention out-proj
        "wo": jax.random.uniform(ks[6], (d_model, d_model), jnp.float32, -sc, sc),
        "bo": jnp.zeros((1, d_model), jnp.float32),
        # feed forward
        "w1": jax.random.uniform(ks[7], (d_model, d_ff), jnp.float32, -sc, sc),
        "b1": jax.random.uniform(ks[8], (1, d_ff), jnp.float32, -sc, sc),
        "w2": jax.random.uniform(ks[9], (d_ff, d_model), jnp.float32, -scf, scf),
        "b2": jnp.zeros((1, d_model), jnp.float32),
        # layer norms (PyTorch default init: weight=1, bias=0)
        "g1": jnp.ones((1, d_model), jnp.float32),
        "be1": jnp.zeros((1, d_model), jnp.float32),
        "g2": jnp.ones((1, d_model), jnp.float32),
        "be2": jnp.zeros((1, d_model), jnp.float32),
    }


if __name__ == "__main__":
    # Small shapes; d_model=128 so the lane-aligned, transpose-free fast path runs.
    seq_len, batch, d_model, n_heads, d_ff = 8, 2, 128, 4, 256
    key = jax.random.PRNGKey(0)
    k_src, k_par = jax.random.split(key)
    src = jax.random.normal(k_src, (seq_len, batch, d_model), jnp.float32)
    params = make_params(k_par, d_model, d_ff)

    out = transformer_encoder_layer(src, params, n_heads)
    out = jax.block_until_ready(out)

    ref = _reference(src, params, n_heads)
    assert out.shape == (seq_len, batch, d_model)
    # bf16 MXU operands with f32 accumulation vs. pure-f32 reference.
    assert jnp.allclose(out, ref, atol=5e-2, rtol=5e-2), "mismatch vs reference"
    print("KERNEL_OK")
</pallas_src>

<mosaic_0001>
module attributes {stable_mosaic.version = 11 : i64} {
  func.func @_encoder_layer_kernel(%arg0: i32, %arg1: memref<8x128xf32, #tpu.memory_space<vmem>>, %arg2: memref<128x384xbf16, #tpu.memory_space<vmem>>, %arg3: memref<1x384xf32, #tpu.memory_space<vmem>>, %arg4: memref<128x128xbf16, #tpu.memory_space<vmem>>, %arg5: memref<128x256xbf16, #tpu.memory_space<vmem>>, %arg6: memref<1x256xf32, #tpu.memory_space<vmem>>, %arg7: memref<256x128xbf16, #tpu.memory_space<vmem>>, %arg8: memref<6x128xf32, #tpu.memory_space<vmem>>, %arg9: memref<8x128xf32, #tpu.memory_space<vmem>>) attributes {dimension_semantics = [#tpu.dimension_semantics<parallel>], iteration_bounds = array<i64: 2>, scalar_prefetch = 0 : i64, scratch_operands = 0 : i64, tpu.core_type = #tpu.core_type<tc>, window_params = [{transform_indices = @transform_0, window_bounds = array<i64: 8, 128>}, {pipeline_mode = #tpu.pipeline_mode<synchronous>, transform_indices = @transform_1, window_bounds = array<i64: 128, 384>}, {pipeline_mode = #tpu.pipeline_mode<synchronous>, transform_indices = @transform_2, window_bounds = array<i64: 1, 384>}, {pipeline_mode = #tpu.pipeline_mode<synchronous>, transform_indices = @transform_3, window_bounds = array<i64: 128, 128>}, {pipeline_mode = #tpu.pipeline_mode<synchronous>, transform_indices = @transform_4, window_bounds = array<i64: 128, 256>}, {pipeline_mode = #tpu.pipeline_mode<synchronous>, transform_indices = @transform_5, window_bounds = array<i64: 1, 256>}, {pipeline_mode = #tpu.pipeline_mode<synchronous>, transform_indices = @transform_6, window_bounds = array<i64: 256, 128>}, {pipeline_mode = #tpu.pipeline_mode<synchronous>, transform_indices = @transform_7, window_bounds = array<i64: 6, 128>}, {transform_indices = @transform_8, window_bounds = array<i64: 8, 128>}]} {
    %c0 = arith.constant 0 : index
    %c0_0 = arith.constant 0 : index
    %0 = vector.load %arg1[%c0, %c0_0] : memref<8x128xf32, #tpu.memory_space<vmem>>, vector<8x128xf32>
    %c0_1 = arith.constant 0 : index
    %c0_2 = arith.constant 0 : index
    %1 = vector.load %arg8[%c0_1, %c0_2] : memref<6x128xf32, #tpu.memory_space<vmem>>, vector<1x128xf32>
    %c1 = arith.constant 1 : index
    %c0_3 = arith.constant 0 : index
    %2 = vector.load %arg8[%c1, %c0_3] : memref<6x128xf32, #tpu.memory_space<vmem>>, vector<1x128xf32>
    %c2 = arith.constant 2 : index
    %c0_4 = arith.constant 0 : index
    %3 = vector.load %arg8[%c2, %c0_4] : memref<6x128xf32, #tpu.memory_space<vmem>>, vector<1x128xf32>
    %c3 = arith.constant 3 : index
    %c0_5 = arith.constant 0 : index
    %4 = vector.load %arg8[%c3, %c0_5] : memref<6x128xf32, #tpu.memory_space<vmem>>, vector<1x128xf32>
    %c4 = arith.constant 4 : index
    %c0_6 = arith.constant 0 : index
    %5 = vector.load %arg8[%c4, %c0_6] : memref<6x128xf32, #tpu.memory_space<vmem>>, vector<1x128xf32>
    %c5 = arith.constant 5 : index
    %c0_7 = arith.constant 0 : index
    %6 = vector.load %arg8[%c5, %c0_7] : memref<6x128xf32, #tpu.memory_space<vmem>>, vector<1x128xf32>
    %7 = arith.truncf %0 : vector<8x128xf32> to vector<8x128xbf16>
    %c0_8 = arith.constant 0 : index
    %c0_9 = arith.constant 0 : index
    %8 = vector.load %arg2[%c0_8, %c0_9] : memref<128x384xbf16, #tpu.memory_space<vmem>>, vector<128x384xbf16>
    %cst = arith.constant dense<0.000000e+00> : vector<8x384xf32>
    %9 = tpu.matmul %7, %8, %cst {dimension_numbers = #tpu.dot_dimension_numbers<[1], [0], [0], [1], [0, 0, 1, 1], [], []>} : vector<8x128xbf16>, vector<128x384xbf16>, vector<8x384xf32> -> vector<8x384xf32>
    %c0_10 = arith.constant 0 : index
    %c0_11 = arith.constant 0 : index
    %10 = vector.load %arg3[%c0_10, %c0_11] : memref<1x384xf32, #tpu.memory_space<vmem>>, vector<1x384xf32>
    %11 = vector.broadcast %10 : vector<1x384xf32> to vector<8x384xf32>
    %12 = arith.addf %9, %11 : vector<8x384xf32>
    %13 = arith.truncf %12 : vector<8x384xf32> to vector<8x384xbf16>
    %cst_12 = arith.constant 0.000000e+00 : f32
    %14 = vector.broadcast %cst_12 : f32 to vector<8x128xf32>
    %15 = vector.extract_strided_slice %13 {offsets = [0, 0], sizes = [8, 32], strides = [1, 1]} : vector<8x384xbf16> to vector<8x32xbf16>
    %16 = vector.extract_strided_slice %13 {offsets = [0, 128], sizes = [8, 32], strides = [1, 1]} : vector<8x384xbf16> to vector<8x32xbf16>
    %17 = vector.extract_strided_slice %13 {offsets = [0, 256], sizes = [8, 32], strides = [1, 1]} : vector<8x384xbf16> to vector<8x32xbf16>
    %cst_13 = arith.constant dense<0.000000e+00> : vector<8x8xf32>
    %18 = tpu.matmul %15, %16, %cst_13 {dimension_numbers = #tpu.dot_dimension_numbers<[1], [1], [0], [0], [0, 0, 1, 0], [], []>} : vector<8x32xbf16>, vector<8x32xbf16>, vector<8x8xf32> -> vector<8x8xf32>
    %cst_14 = arith.constant dense<0xFF800000> : vector<8xf32>
    %19 = vector.multi_reduction <maximumf>, %18, %cst_14 [1] : vector<8x8xf32> to vector<8xf32>
    %20 = vector.shape_cast %19 : vector<8xf32> to vector<8x1xf32>
    %21 = vector.broadcast %20 : vector<8x1xf32> to vector<8x8xf32>
    %22 = arith.subf %18, %21 : vector<8x8xf32>
    %23 = math.exp %22 : vector<8x8xf32>
    %cst_15 = arith.constant dense<0.000000e+00> : vector<8xf32>
    %24 = vector.multi_reduction <add>, %23, %cst_15 [1] : vector<8x8xf32> to vector<8xf32>
    %25 = vector.shape_cast %24 : vector<8xf32> to vector<8x1xf32>
    %26 = tpu.reciprocal %25 {approx = true} : vector<8x1xf32> -> vector<8x1xf32>
    %27 = vector.broadcast %26 : vector<8x1xf32> to vector<8x8xf32>
    %28 = arith.mulf %23, %27 : vector<8x8xf32>
    %29 = arith.truncf %28 : vector<8x8xf32> to vector<8x8xbf16>
    %cst_16 = arith.constant dense<0.000000e+00> : vector<8x32xf32>
    %30 = tpu.matmul %29, %17, %cst_16 {dimension_numbers = #tpu.dot_dimension_numbers<[1], [0], [0], [1], [0, 0, 1, 1], [], []>} : vector<8x8xbf16>, vector<8x32xbf16>, vector<8x32xf32> -> vector<8x32xf32>
    %31 = arith.truncf %30 : vector<8x32xf32> to vector<8x32xbf16>
    %c0_17 = arith.constant 0 : index
    %c0_18 = arith.constant 0 : index
    %32 = vector.load %arg4[%c0_17, %c0_18] : memref<128x128xbf16, #tpu.memory_space<vmem>>, vector<32x128xbf16>
    %cst_19 = arith.constant dense<0.000000e+00> : vector<8x128xf32>
    %33 = tpu.matmul %31, %32, %cst_19 {dimension_numbers = #tpu.dot_dimension_numbers<[1], [0], [0], [1], [0, 0, 1, 1], [], []>} : vector<8x32xbf16>, vector<32x128xbf16>, vector<8x128xf32> -> vector<8x128xf32>
    %34 = arith.addf %14, %33 : vector<8x128xf32>
    %35 = vector.extract_strided_slice %13 {offsets = [0, 32], sizes = [8, 32], strides = [1, 1]} : vector<8x384xbf16> to vector<8x32xbf16>
    %36 = vector.extract_strided_slice %13 {offsets = [0, 160], sizes = [8, 32], strides = [1, 1]} : vector<8x384xbf16> to vector<8x32xbf16>
    %37 = vector.extract_strided_slice %13 {offsets = [0, 288], sizes = [8, 32], strides = [1, 1]} : vector<8x384xbf16> to vector<8x32xbf16>
    %cst_20 = arith.constant dense<0.000000e+00> : vector<8x8xf32>
    %38 = tpu.matmul %35, %36, %cst_20 {dimension_numbers = #tpu.dot_dimension_numbers<[1], [1], [0], [0], [0, 0, 1, 0], [], []>} : vector<8x32xbf16>, vector<8x32xbf16>, vector<8x8xf32> -> vector<8x8xf32>
    %cst_21 = arith.constant dense<0xFF800000> : vector<8xf32>
    %39 = vector.multi_reduction <maximumf>, %38, %cst_21 [1] : vector<8x8xf32> to vector<8xf32>
    %40 = vector.shape_cast %39 : vector<8xf32> to vector<8x1xf32>
    %41 = vector.broadcast %40 : vector<8x1xf32> to vector<8x8xf32>
    %42 = arith.subf %38, %41 : vector<8x8xf32>
    %43 = math.exp %42 : vector<8x8xf32>
    %cst_22 = arith.constant dense<0.000000e+00> : vector<8xf32>
    %44 = vector.multi_reduction <add>, %43, %cst_22 [1] : vector<8x8xf32> to vector<8xf32>
    %45 = vector.shape_cast %44 : vector<8xf32> to vector<8x1xf32>
    %46 = tpu.reciprocal %45 {approx = true} : vector<8x1xf32> -> vector<8x1xf32>
    %47 = vector.broadcast %46 : vector<8x1xf32> to vector<8x8xf32>
    %48 = arith.mulf %43, %47 : vector<8x8xf32>
    %49 = arith.truncf %48 : vector<8x8xf32> to vector<8x8xbf16>
    %cst_23 = arith.constant dense<0.000000e+00> : vector<8x32xf32>
    %50 = tpu.matmul %49, %37, %cst_23 {dimension_numbers = #tpu.dot_dimension_numbers<[1], [0], [0], [1], [0, 0, 1, 1], [], []>} : vector<8x8xbf16>, vector<8x32xbf16>, vector<8x32xf32> -> vector<8x32xf32>
    %51 = arith.truncf %50 : vector<8x32xf32> to vector<8x32xbf16>
    %c32 = arith.constant 32 : index
    %c0_24 = arith.constant 0 : index
    %52 = vector.load %arg4[%c32, %c0_24] : memref<128x128xbf16, #tpu.memory_space<vmem>>, vector<32x128xbf16>
    %cst_25 = arith.constant dense<0.000000e+00> : vector<8x128xf32>
    %53 = tpu.matmul %51, %52, %cst_25 {dimension_numbers = #tpu.dot_dimension_numbers<[1], [0], [0], [1], [0, 0, 1, 1], [], []>} : vector<8x32xbf16>, vector<32x128xbf16>, vector<8x128xf32> -> vector<8x128xf32>
    %54 = arith.addf %34, %53 : vector<8x128xf32>
    %55 = vector.extract_strided_slice %13 {offsets = [0, 64], sizes = [8, 32], strides = [1, 1]} : vector<8x384xbf16> to vector<8x32xbf16>
    %56 = vector.extract_strided_slice %13 {offsets = [0, 192], sizes = [8, 32], strides = [1, 1]} : vector<8x384xbf16> to vector<8x32xbf16>
    %57 = vector.extract_strided_slice %13 {offsets = [0, 320], sizes = [8, 32], strides = [1, 1]} : vector<8x384xbf16> to vector<8x32xbf16>
    %cst_26 = arith.constant dense<0.000000e+00> : vector<8x8xf32>
    %58 = tpu.matmul %55, %56, %cst_26 {dimension_numbers = #tpu.dot_dimension_numbers<[1], [1], [0], [0], [0, 0, 1, 0], [], []>} : vector<8x32xbf16>, vector<8x32xbf16>, vector<8x8xf32> -> vector<8x8xf32>
    %cst_27 = arith.constant dense<0xFF800000> : vector<8xf32>
    %59 = vector.multi_reduction <maximumf>, %58, %cst_27 [1] : vector<8x8xf32> to vector<8xf32>
    %60 = vector.shape_cast %59 : vector<8xf32> to vector<8x1xf32>
    %61 = vector.broadcast %60 : vector<8x1xf32> to vector<8x8xf32>
    %62 = arith.subf %58, %61 : vector<8x8xf32>
    %63 = math.exp %62 : vector<8x8xf32>
    %cst_28 = arith.constant dense<0.000000e+00> : vector<8xf32>
    %64 = vector.multi_reduction <add>, %63, %cst_28 [1] : vector<8x8xf32> to vector<8xf32>
    %65 = vector.shape_cast %64 : vector<8xf32> to vector<8x1xf32>
    %66 = tpu.reciprocal %65 {approx = true} : vector<8x1xf32> -> vector<8x1xf32>
    %67 = vector.broadcast %66 : vector<8x1xf32> to vector<8x8xf32>
    %68 = arith.mulf %63, %67 : vector<8x8xf32>
    %69 = arith.truncf %68 : vector<8x8xf32> to vector<8x8xbf16>
    %cst_29 = arith.constant dense<0.000000e+00> : vector<8x32xf32>
    %70 = tpu.matmul %69, %57, %cst_29 {dimension_numbers = #tpu.dot_dimension_numbers<[1], [0], [0], [1], [0, 0, 1, 1], [], []>} : vector<8x8xbf16>, vector<8x32xbf16>, vector<8x32xf32> -> vector<8x32xf32>
    %71 = arith.truncf %70 : vector<8x32xf32> to vector<8x32xbf16>
    %c64 = arith.constant 64 : index
    %c0_30 = arith.constant 0 : index
    %72 = vector.load %arg4[%c64, %c0_30] : memref<128x128xbf16, #tpu.memory_space<vmem>>, vector<32x128xbf16>
    %cst_31 = arith.constant dense<0.000000e+00> : vector<8x128xf32>
    %73 = tpu.matmul %71, %72, %cst_31 {dimension_numbers = #tpu.dot_dimension_numbers<[1], [0], [0], [1], [0, 0, 1, 1], [], []>} : vector<8x32xbf16>, vector<32x128xbf16>, vector<8x128xf32> -> vector<8x128xf32>
    %74 = arith.addf %54, %73 : vector<8x128xf32>
    %75 = vector.extract_strided_slice %13 {offsets = [0, 96], sizes = [8, 32], strides = [1, 1]} : vector<8x384xbf16> to vector<8x32xbf16>
    %76 = vector.extract_strided_slice %13 {offsets = [0, 224], sizes = [8, 32], strides = [1, 1]} : vector<8x384xbf16> to vector<8x32xbf16>
    %77 = vector.extract_strided_slice %13 {offsets = [0, 352], sizes = [8, 32], strides = [1, 1]} : vector<8x384xbf16> to vector<8x32xbf16>
    %cst_32 = arith.constant dense<0.000000e+00> : vector<8x8xf32>
    %78 = tpu.matmul %75, %76, %cst_32 {dimension_numbers = #tpu.dot_dimension_numbers<[1], [1], [0], [0], [0, 0, 1, 0], [], []>} : vector<8x32xbf16>, vector<8x32xbf16>, vector<8x8xf32> -> vector<8x8xf32>
    %cst_33 = arith.constant dense<0xFF800000> : vector<8xf32>
    %79 = vector.multi_reduction <maximumf>, %78, %cst_33 [1] : vector<8x8xf32> to vector<8xf32>
    %80 = vector.shape_cast %79 : vector<8xf32> to vector<8x1xf32>
    %81 = vector.broadcast %80 : vector<8x1xf32> to vector<8x8xf32>
    %82 = arith.subf %78, %81 : vector<8x8xf32>
    %83 = math.exp %82 : vector<8x8xf32>
    %cst_34 = arith.constant dense<0.000000e+00> : vector<8xf32>
    %84 = vector.multi_reduction <add>, %83, %cst_34 [1] : vector<8x8xf32> to vector<8xf32>
    %85 = vector.shape_cast %84 : vector<8xf32> to vector<8x1xf32>
    %86 = tpu.reciprocal %85 {approx = true} : vector<8x1xf32> -> vector<8x1xf32>
    %87 = vector.broadcast %86 : vector<8x1xf32> to vector<8x8xf32>
    %88 = arith.mulf %83, %87 : vector<8x8xf32>
    %89 = arith.truncf %88 : vector<8x8xf32> to vector<8x8xbf16>
    %cst_35 = arith.constant dense<0.000000e+00> : vector<8x32xf32>
    %90 = tpu.matmul %89, %77, %cst_35 {dimension_numbers = #tpu.dot_dimension_numbers<[1], [0], [0], [1], [0, 0, 1, 1], [], []>} : vector<8x8xbf16>, vector<8x32xbf16>, vector<8x32xf32> -> vector<8x32xf32>
    %91 = arith.truncf %90 : vector<8x32xf32> to vector<8x32xbf16>
    %c96 = arith.constant 96 : index
    %c0_36 = arith.constant 0 : index
    %92 = vector.load %arg4[%c96, %c0_36] : memref<128x128xbf16, #tpu.memory_space<vmem>>, vector<32x128xbf16>
    %cst_37 = arith.constant dense<0.000000e+00> : vector<8x128xf32>
    %93 = tpu.matmul %91, %92, %cst_37 {dimension_numbers = #tpu.dot_dimension_numbers<[1], [0], [0], [1], [0, 0, 1, 1], [], []>} : vector<8x32xbf16>, vector<32x128xbf16>, vector<8x128xf32> -> vector<8x128xf32>
    %94 = arith.addf %74, %93 : vector<8x128xf32>
    %95 = arith.addf %0, %94 : vector<8x128xf32>
    %96 = vector.broadcast %1 : vector<1x128xf32> to vector<8x128xf32>
    %97 = arith.addf %95, %96 : vector<8x128xf32>
    %cst_38 = arith.constant dense<0.000000e+00> : vector<8xf32>
    %98 = vector.multi_reduction <add>, %97, %cst_38 [1] : vector<8x128xf32> to vector<8xf32>
    %99 = vector.shape_cast %98 : vector<8xf32> to vector<8x1xf32>
    %cst_39 = arith.constant 1.280000e+02 : f32
    %100 = vector.broadcast %cst_39 : f32 to vector<8x1xf32>
    %101 = arith.divf %99, %100 : vector<8x1xf32>
    %102 = arith.mulf %97, %97 : vector<8x128xf32>
    %cst_40 = arith.constant dense<0.000000e+00> : vector<8xf32>
    %103 = vector.multi_reduction <add>, %102, %cst_40 [1] : vector<8x128xf32> to vector<8xf32>
    %104 = vector.shape_cast %103 : vector<8xf32> to vector<8x1xf32>
    %cst_41 = arith.constant 1.280000e+02 : f32
    %105 = vector.broadcast %cst_41 : f32 to vector<8x1xf32>
    %106 = arith.divf %104, %105 : vector<8x1xf32>
    %107 = vector.broadcast %101 : vector<8x1xf32> to vector<8x128xf32>
    %108 = arith.subf %97, %107 : vector<8x128xf32>
    %109 = arith.mulf %101, %101 : vector<8x1xf32>
    %110 = arith.subf %106, %109 : vector<8x1xf32>
    %cst_42 = arith.constant 9.99999974E-6 : f32
    %111 = vector.broadcast %cst_42 : f32 to vector<8x1xf32>
    %112 = arith.addf %110, %111 : vector<8x1xf32>
    %113 = math.rsqrt %112 : vector<8x1xf32>
    %114 = vector.broadcast %113 : vector<8x1xf32> to vector<8x128xf32>
    %115 = arith.mulf %108, %114 : vector<8x128xf32>
    %116 = vector.broadcast %3 : vector<1x128xf32> to vector<8x128xf32>
    %117 = arith.mulf %115, %116 : vector<8x128xf32>
    %118 = vector.broadcast %4 : vector<1x128xf32> to vector<8x128xf32>
    %119 = arith.addf %117, %118 : vector<8x128xf32>
    %120 = arith.truncf %119 : vector<8x128xf32> to vector<8x128xbf16>
    %cst_43 = arith.constant 0.000000e+00 : f32
    %121 = vector.broadcast %cst_43 : f32 to vector<8x128xf32>
    %c0_44 = arith.constant 0 : index
    %c0_45 = arith.constant 0 : index
    %122 = vector.load %arg5[%c0_44, %c0_45] : memref<128x256xbf16, #tpu.memory_space<vmem>>, vector<128x256xbf16>
    %cst_46 = arith.constant dense<0.000000e+00> : vector<8x256xf32>
    %123 = tpu.matmul %120, %122, %cst_46 {dimension_numbers = #tpu.dot_dimension_numbers<[1], [0], [0], [1], [0, 0, 1, 1], [], []>} : vector<8x128xbf16>, vector<128x256xbf16>, vector<8x256xf32> -> vector<8x256xf32>
    %c0_47 = arith.constant 0 : index
    %c0_48 = arith.constant 0 : index
    %124 = vector.load %arg6[%c0_47, %c0_48] : memref<1x256xf32, #tpu.memory_space<vmem>>, vector<1x256xf32>
    %125 = vector.broadcast %124 : vector<1x256xf32> to vector<8x256xf32>
    %126 = arith.addf %123, %125 : vector<8x256xf32>
    %cst_49 = arith.constant 0.000000e+00 : f32
    %127 = vector.broadcast %cst_49 : f32 to vector<8x256xf32>
    %128 = arith.maximumf %126, %127 : vector<8x256xf32>
    %129 = arith.truncf %128 : vector<8x256xf32> to vector<8x256xbf16>
    %c0_50 = arith.constant 0 : index
    %c0_51 = arith.constant 0 : index
    %130 = vector.load %arg7[%c0_50, %c0_51] : memref<256x128xbf16, #tpu.memory_space<vmem>>, vector<256x128xbf16>
    %cst_52 = arith.constant dense<0.000000e+00> : vector<8x128xf32>
    %131 = tpu.matmul %129, %130, %cst_52 {dimension_numbers = #tpu.dot_dimension_numbers<[1], [0], [0], [1], [0, 0, 1, 1], [], []>} : vector<8x256xbf16>, vector<256x128xbf16>, vector<8x128xf32> -> vector<8x128xf32>
    %132 = arith.addf %121, %131 : vector<8x128xf32>
    %133 = arith.addf %119, %132 : vector<8x128xf32>
    %134 = vector.broadcast %2 : vector<1x128xf32> to vector<8x128xf32>
    %135 = arith.addf %133, %134 : vector<8x128xf32>
    %cst_53 = arith.constant dense<0.000000e+00> : vector<8xf32>
    %136 = vector.multi_reduction <add>, %135, %cst_53 [1] : vector<8x128xf32> to vector<8xf32>
    %137 = vector.shape_cast %136 : vector<8xf32> to vector<8x1xf32>
    %cst_54 = arith.constant 1.280000e+02 : f32
    %138 = vector.broadcast %cst_54 : f32 to vector<8x1xf32>
    %139 = arith.divf %137, %138 : vector<8x1xf32>
    %140 = arith.mulf %135, %135 : vector<8x128xf32>
    %cst_55 = arith.constant dense<0.000000e+00> : vector<8xf32>
    %141 = vector.multi_reduction <add>, %140, %cst_55 [1] : vector<8x128xf32> to vector<8xf32>
    %142 = vector.shape_cast %141 : vector<8xf32> to vector<8x1xf32>
    %cst_56 = arith.constant 1.280000e+02 : f32
    %143 = vector.broadcast %cst_56 : f32 to vector<8x1xf32>
    %144 = arith.divf %142, %143 : vector<8x1xf32>
    %145 = vector.broadcast %139 : vector<8x1xf32> to vector<8x128xf32>
    %146 = arith.subf %135, %145 : vector<8x128xf32>
    %147 = arith.mulf %139, %139 : vector<8x1xf32>
    %148 = arith.subf %144, %147 : vector<8x1xf32>
    %cst_57 = arith.constant 9.99999974E-6 : f32
    %149 = vector.broadcast %cst_57 : f32 to vector<8x1xf32>
    %150 = arith.addf %148, %149 : vector<8x1xf32>
    %151 = math.rsqrt %150 : vector<8x1xf32>
    %152 = vector.broadcast %151 : vector<8x1xf32> to vector<8x128xf32>
    %153 = arith.mulf %146, %152 : vector<8x128xf32>
    %154 = vector.broadcast %5 : vector<1x128xf32> to vector<8x128xf32>
    %155 = arith.mulf %153, %154 : vector<8x128xf32>
    %156 = vector.broadcast %6 : vector<1x128xf32> to vector<8x128xf32>
    %157 = arith.addf %155, %156 : vector<8x128xf32>
    %c0_58 = arith.constant 0 : index
    %c0_59 = arith.constant 0 : index
    %158 = vector.load %arg9[%c0_58, %c0_59] : memref<8x128xf32, #tpu.memory_space<vmem>>, vector<8x128xf32>
    tpu.vector_store %arg9[%c0_58, %c0_59], %157 {strides = array<i32>} : memref<8x128xf32, #tpu.memory_space<vmem>>, vector<8x128xf32>,
    return
  }
  func.func @transform_0(%arg0: i32) -> (i32, i32) {
    %c0_i32 = arith.constant 0 : i32
    %c0_i32_0 = arith.constant 0 : i32
    return %c0_i32, %arg0 : i32, i32
  }
  func.func @transform_1(%arg0: i32) -> (i32, i32) {
    %c0_i32 = arith.constant 0 : i32
    %c0_i32_0 = arith.constant 0 : i32
    %c0_i32_1 = arith.constant 0 : i32
    return %c0_i32, %c0_i32_0 : i32, i32
  }
  func.func @transform_2(%arg0: i32) -> (i32, i32) {
    %c0_i32 = arith.constant 0 : i32
    %c0_i32_0 = arith.constant 0 : i32
    %c0_i32_1 = arith.constant 0 : i32
    return %c0_i32, %c0_i32_0 : i32, i32
  }
  func.func @transform_3(%arg0: i32) -> (i32, i32) {
    %c0_i32 = arith.constant 0 : i32
    %c0_i32_0 = arith.constant 0 : i32
    %c0_i32_1 = arith.constant 0 : i32
    return %c0_i32, %c0_i32_0 : i32, i32
  }
  func.func @transform_4(%arg0: i32) -> (i32, i32) {
    %c0_i32 = arith.constant 0 : i32
    %c0_i32_0 = arith.constant 0 : i32
    %c0_i32_1 = arith.constant 0 : i32
    return %c0_i32, %c0_i32_0 : i32, i32
  }
  func.func @transform_5(%arg0: i32) -> (i32, i32) {
    %c0_i32 = arith.constant 0 : i32
    %c0_i32_0 = arith.constant 0 : i32
    %c0_i32_1 = arith.constant 0 : i32
    return %c0_i32, %c0_i32_0 : i32, i32
  }
  func.func @transform_6(%arg0: i32) -> (i32, i32) {
    %c0_i32 = arith.constant 0 : i32
    %c0_i32_0 = arith.constant 0 : i32
    %c0_i32_1 = arith.constant 0 : i32
    return %c0_i32, %c0_i32_0 : i32, i32
  }
  func.func @transform_7(%arg0: i32) -> (i32, i32) {
    %c0_i32 = arith.constant 0 : i32
    %c0_i32_0 = arith.constant 0 : i32
    %c0_i32_1 = arith.constant 0 : i32
    return %c0_i32, %c0_i32_0 : i32, i32
  }
  func.func @transform_8(%arg0: i32) -> (i32, i32) {
    %c0_i32 = arith.constant 0 : i32
    %c0_i32_0 = arith.constant 0 : i32
    return %c0_i32, %arg0 : i32, i32
  }
}

</mosaic_0001>

<bundles_post_ra>
// kernel: tpu_custom_call.1
= control target key start
LH: loop header
LB: loop body
LE: loop exit
PB: predicated region body
PF: predicated region fallthrough
CT: control target
= control target key end

     0   :  { %s3004_s0 = inlined_call_operand.hbm [shape: f32[8,256], index: 0, kind: input, shape index: {}]   ;;  %s3005_s1 = inlined_call_operand.hbm [shape: bf16[128,384], index: 1, kind: input, shape index: {}]   ;;  %s3006_s2 = inlined_call_operand.vmem [shape: f32[1,384], index: 2, kind: input, shape index: {}]   ;;  %s3007_s3 = inlined_call_operand.hbm [shape: bf16[128,128], index: 3, kind: input, shape index: {}]   ;;  %s3008_s4 = inlined_call_operand.hbm [shape: bf16[128,256], index: 4, kind: input, shape index: {}]   ;;  %s3009_s5 = inlined_call_operand.hbm [shape: f32[1,256], index: 5, kind: input, shape index: {}]   ;;  %s3010_s6 = inlined_call_operand.hbm [shape: bf16[256,128], index: 6, kind: input, shape index: {}]   ;;  %s3011_s7 = inlined_call_operand.vmem [shape: f32[6,128], index: 7, kind: input, shape index: {}]   ;;  %s3012_s8 = inlined_call_operand.hbm [shape: f32[8,256], index: 8, kind: output, shape index: {}]  }
   0x1   :  { %3017 = sst [smem:[#allocation19_spill]] %s3005_s1 }
   0x2   :  { %3018 = sst [smem:[#allocation20_spill]] %s3007_s3 }
   0x3   :  { %3019 = sst [smem:[#allocation21_spill]] %s3008_s4 }
   0x4   :  { %13 = vsyncpa [#allocation3], 0 }
   0x5   :  { %15 = vsyncpa [#allocation3 + $0x1], 0 }
   0x6   :  { %16 = vsyncpa [#allocation6], 0 }
   0x7   :  { %17 = vsyncpa [#allocation9], 0 }
   0x8   :  { %18 = vsyncpa [#allocation12], 0 }
   0x9   :  { %19 = vsyncpa [#allocation4], 0 }
   0xa   :  { %21 = vsyncpa [#allocation4 + $0x1], 0  ;;  %s2630_s27 = smov 0   ;;  %s2632_s28 = smov 0  }
   0xb   :  { %s2634_s29 = smov 0   ;;  %s2636_s30 = smov 0  }
   0xc LB: > { %s2566_s9 = smov [#allocation5]   ;;  %s2651_s11 = sadd.s32 4294967295, %s2564_s30   ;;  %s2564_s30 = sphi %s2636_s30, %s3045_s30   ;;  %s2560_s29 = sphi %s2634_s29, %s3044_s29   ;;  %s2556_s28 = sphi %s2632_s28, %s3043_s28   ;;  %s2552_s27 = sphi %s2630_s27, %s3042_s27  }
   0xd   : > { %s243_s10 = sshll.u32 %s2566_s9, 4  ;;  %p1859_p0 = scmp.ge.s32.totalorder %s2564_s30, 1  ;;  %s244_s10 = int_to_ptr.vmem [resolvable:$true] %s243_s10 }
   0xe   : > { %p3013_p1 = scmp.eq.s32.totalorder %s2651_s11, 0  ;;  %p231_p2 = scmp.lt.s32.totalorder %s2564_s30, 3 }
   0xf   : > { %s2567_s13 = smov [#allocation8]   ;;  %s2568_s16 = smov [#allocation7]  }
  0x10   : > { %p2656_p3 = pnand %p1859_p0, %p231_p2  ;;  %s272_s14 = sshll.u32 %s2567_s13, 4  ;;  %s2669_s14 = int_to_ptr.vmem [resolvable:$true] %s272_s14 }
  0x11   : > { %s2671_s17 = sshll.u32 %s2568_s16, 4  ;;  %s2341_s19 = scalar_lea.vmem %s244_s10, 3072  ;;  %s260_s17 = int_to_ptr.vmem [resolvable:$true] %s2671_s17 }
  0x12   : > { %s3020_s12 = scalar_select %p2656_p3, 1, 0 }
  0x13   : > { %p2145_p5 = pneg %p2656_p3  ;;  %p2342_p8 = scmp.ne.s32.totalorder %s244_s10, %s2341_s19 }
  0x14   : > { %p2349_p11 = scmp.lt.s32.totalorder %s244_s10, %s244_s10  ;;  %p2350_p12 = scmp.lt.s32.totalorder %s2341_s19, %s2341_s19 }
  0x15   : > { %p2665_p6 = pnand %p2145_p5, %p3013_p1 }
  0x16   : > { %p2351_p13 = por %p2350_p12, %p2349_p11 }
  0x17   : > { %p2675_p7 = pneg %p2665_p6 }
  0x19   : > { %p2344_p9 = pnand %p2342_p8, %p2675_p7 }
  0x1b   : > { %p2345_p10 = pneg %p2344_p9 }
  0x1d   : > { %p2352_p0 = pnand %p2351_p13, %p2345_p10 }
  0x1f   : > { %2355 = shalt.err (!%p2352_p0)
}
  0x20   : > { %s2569_s20 = smov 192   ;;  %s2570_s21 = smov 12  }
  0x21   : > { %s3023_s1 = sld [smem:[#allocation19_spill]]  ;;  %s2367_s24 = scalar_lea.vmem %s2669_s14, 2048 }
  0x22   : > { %p2368_p2 = scmp.ne.s32.totalorder %s2669_s14, %s2367_s24  ;;  %p2375_p9 = scmp.lt.s32.totalorder %s2669_s14, %s2669_s14 }
  0x23   : > { %p2376_p10 = scmp.lt.s32.totalorder %s2367_s24, %s2367_s24 }
  0x24   : > { %p2370_p5 = pnand %p2368_p2, %p2675_p7 }
  0x25   : > { %p2377_p11 = por %p2376_p10, %p2375_p9 }
  0x26   : > { %p2371_p8 = pneg %p2370_p5 }
  0x27   : > { %2148 = dma.hbm_to_vmem [thread:$0]  (!%p2665_p6), %s3023_s1, 3072, %s244_s10, [#allocation6], %s2569_s20, %s2569_s20, %s2570_s21  }
  0x28   : > { %p2378_p12 = pnand %p2377_p11, %p2371_p8 }
  0x2a   : > { %2381 = shalt.err (!%p2378_p12)
}
  0x2b   : > { %s2571_s25 = smov 128   ;;  %s2572_s26 = smov 8  }
  0x2c   : > { %s3024_s4 = sld [smem:[#allocation21_spill]]  ;;  %s2393_s13 = scalar_lea.vmem %s260_s17, 1024 }
  0x2d   : > { %p2394_p13 = scmp.ne.s32.totalorder %s260_s17, %s2393_s13  ;;  %p2401_p5 = scmp.lt.s32.totalorder %s260_s17, %s260_s17 }
  0x2e   : > { %p2402_p8 = scmp.lt.s32.totalorder %s2393_s13, %s2393_s13 }
  0x2f   : > { %p2396_p0 = pnand %p2394_p13, %p2675_p7 }
  0x30   : > { %p2403_p9 = por %p2402_p8, %p2401_p5 }
  0x31   : > { %p2397_p2 = pneg %p2396_p0 }
  0x32   : > { %2154 = dma.hbm_to_vmem [thread:$0]  (!%p2665_p6), %s3024_s4, 2048, %s2669_s14, [#allocation9], %s2571_s25, %s2571_s25, %s2572_s26  }
  0x33   : > { %p2404_p10 = pnand %p2403_p9, %p2397_p2 }
  0x35   : > { %2407 = shalt.err (!%p2404_p10)
}
  0x36   : > { %s2573_s16 = smov 64   ;;  %s2574_s19 = smov 4  }
  0x37   : > { %s3025_s3 = sld [smem:[#allocation20_spill]]  ;;  %s2575_s21 = smov [#allocation10]  }
  0x38   : > { %s286_s22 = sshll.u32 %s2575_s21, 4  ;;  %s2576_s23 = smov [#allocation11]   ;;  %s287_s22 = int_to_ptr.vmem [resolvable:$true] %s286_s22 }
  0x39   : > { %s296_s24 = sshll.u32 %s2576_s23, 4  ;;  %s2419_s25 = scalar_lea.vmem %s287_s22, 32  ;;  %s297_s24 = int_to_ptr.vmem [resolvable:$true] %s296_s24 }
  0x3a   : > { %p2420_p11 = scmp.ne.s32.totalorder %s287_s22, %s2419_s25  ;;  %p2427_p0 = scmp.lt.s32.totalorder %s287_s22, %s287_s22 }
  0x3b   : > { %p2428_p2 = scmp.lt.s32.totalorder %s2419_s25, %s2419_s25 }
  0x3c   : > { %p2422_p12 = pnand %p2420_p11, %p2675_p7 }
  0x3d   : > { %2151 = dma.hbm_to_vmem [thread:$0]  (!%p2665_p6), %s3025_s3, 1024, %s260_s17, [#allocation6], %s2573_s16, %s2573_s16, %s2574_s19  }
  0x3e   : > { %p2423_p13 = pneg %p2422_p12  ;;  %p2429_p5 = por %p2428_p2, %p2427_p0 }
  0x40   : > { %p2430_p8 = pnand %p2429_p5, %p2423_p13 }
  0x42   : > { %2433 = shalt.err (!%p2430_p8)
}
  0x43   : > { %2157 = dma.hbm_to_vmem [thread:$0]  (!%p2665_p6), %s3009_s5, 32, %s287_s22, [#allocation9]  }
  0x44   : > { %s2445_s17 = scalar_lea.vmem %s297_s24, 2048  ;;  %p2453_p11 = scmp.lt.s32.totalorder %s297_s24, %s297_s24 }
  0x45   : > { %p2446_p9 = scmp.ne.s32.totalorder %s297_s24, %s2445_s17  ;;  %p2454_p12 = scmp.lt.s32.totalorder %s2445_s17, %s2445_s17 }
  0x47   : > { %p2448_p10 = pnand %p2446_p9, %p2675_p7  ;;  %p2455_p1 = por %p2454_p12, %p2453_p11 }
  0x49   : > { %p2449_p4 = pneg %p2448_p10 }
  0x4b   : > { %p2456_p3 = pnand %p2455_p1, %p2449_p4 }
  0x4d   : > { %2459 = shalt.err (!%p2456_p3)
}
  0x4e   : > { %2160 = dma.hbm_to_vmem [thread:$0]  (!%p2665_p6), %s3010_s6, 2048, %s297_s24, [#allocation12], %s2573_s16, %s2573_s16, %s2574_s19  }
  0x4f   : > { %s1858_s15 = sadd.s32 4294967294, %s2564_s30   ;;  %s2728_s18 = sadd.s32 1, %s2564_s30  }
  0x50   : > { %s34_s14 = sadd.s32 1, %s2560_s29  ;;  %s31_s20 = ssub.s32 %s2564_s30, %s2728_s18 }
  0x51   : > { %p41_p1 = scmp.ne.s32.totalorder %s2560_s29, %s2556_s28  ;;  %p32_p3 = scmp.eq.s32.totalorder %s31_s20, 0 }
  0x52   : > { %p42_p4 = scmp.eq.s32.totalorder %s2564_s30, 0  ;;  %p47_p7 = scmp.ne.s32.totalorder %s2556_s28, %s2552_s27 }
  0x53   : > { %p218_p13 = scmp.eq.s32.totalorder %s2651_s11, 1  ;;  %p3026_p2 = scmp.eq.s32.totalorder %s2651_s11, 0 }
  0x54   : > { %s2740_s21 = scalar_select %p32_p3, %s2560_s29, %s34_s14  }
  0x55   : > { %p43_p0 = por %p42_p4, %p41_p1  ;;  %p2744_p5 = por %p3026_p2, %p47_p7 }
  0x56   : > { %p2748_p6 = por %p218_p13, %p41_p1  ;;  %p224_p8 = scmp.eq.s32.totalorder %s1858_s15, 1 }
  0x57   : > { %s3027_s22 = scalar_select %p2744_p5, 1, 0 }
  0x58   : > { %s3028_s16 = scalar_select %p2748_p6, 1, 0 }
  0x59   : > { %p2174_p9 = scmp.lt.s32.totalorder %s2564_s30, 2  ;;  %s313_s19 = sand.u32 1, %s2560_s29  }
  0x5a   : > { %p2754_p10 = por %p224_p8, %p47_p7  ;;  %s1866_s24 = sshll.u32 %s313_s19, 3 }
  0x5b   : > { %s1867_s25 = sshll.u32 %s2564_s30, 7  ;;  %s317_s10 = scalar_lea.vmem [#allocation2], %s1866_s24 }
  0x5c   : > { %s3029_s23 = scalar_select %p2754_p10, 1, 0 }
  0x5d   : > { %s2762_s17 = scalar_lea.hbm %s3004_s0, %s1867_s25  ;;  %s324_s13 = sshll.u32 %s317_s10, 4  ;;  %s325_s13 = int_to_ptr.vmem [resolvable:$true] %s324_s13 }
  0x5e   : > { %p2764_p11 = pnand %p2174_p9, %p43_p0  ;;  %s314_s14 = scalar_lea.sflag [#allocation3], %s313_s19 }
  0x5f   : > { %s2460_s20 = scalar_lea.hbm %s2762_s17, 128  ;;  %s2465_s9 = scalar_lea.hbm %s3004_s0, 256 }
  0x60   : > { %p2461_p12 = scmp.ne.s32.totalorder %s2762_s17, %s2460_s20  ;;  %p2462_p1 = pneg %p2764_p11 }
  0x61   : > { %p2466_p7 = scmp.lt.s32.totalorder %s2762_s17, %s3004_s0  ;;  %p2467_p13 = scmp.lt.s32.totalorder %s2465_s9, %s2460_s20 }
  0x62   : > { %p2463_p3 = pnand %p2462_p1, %p2461_p12 }
  0x63   : > { %p2468_p0 = por %p2467_p13, %p2466_p7 }
  0x64   : > { %p2464_p4 = pneg %p2463_p3 }
  0x66   : > { %p2469_p2 = pnand %p2468_p0, %p2464_p4 }
  0x68   : > { %2472 = shalt.err (!%p2469_p2)
}
  0x69   : > { %s2473_s10 = scalar_lea.vmem %s325_s13, 128  ;;  %s2577_s19 = smov [#allocation2]  }
  0x6a   : > { %p2474_p8 = scmp.ne.s32.totalorder %s325_s13, %s2473_s10  ;;  %s2478_s3 = sshll.u32 %s2577_s19, 4  ;;  %s2479_s3 = int_to_ptr.vmem [resolvable:$false] %s2478_s3 }
  0x6b   : > { %s2480_s4 = scalar_lea.vmem %s2479_s3, 256  ;;  %p2481_p12 = scmp.lt.s32.totalorder %s325_s13, %s2479_s3 }
  0x6c   : > { %p2476_p9 = pnand %p2474_p8, %p2462_p1  ;;  %p2482_p3 = scmp.lt.s32.totalorder %s2480_s4, %s2473_s10 }
  0x6e   : > { %p2477_p10 = pneg %p2476_p9  ;;  %p2483_p6 = por %p2482_p3, %p2481_p12 }
  0x70   : > { %p2484_p5 = pnand %p2483_p6, %p2477_p10 }
  0x72   : > { %2487 = shalt.err (!%p2484_p5)
}
  0x73   : > { %2164 = dma.hbm_to_vmem [thread:$0]  (!%p2764_p11), %s2762_s17, 128, %s325_s13, %s314_s14  }
  0x74   : > { %p3031_p4 = scmp.ne.s32.totalorder %s3020_s12, 0 }
  0x75   : > { %s2785_s1 = sand.u32 (!%p3031_p4), 1, %s2556_s28   ;;  %p3032_p5 = scmp.ne.s32.totalorder (!%p3031_p4), %s3027_s22, 0 }
  0x76   : > { %333 = sbr.rel (%p3031_p4) target bundleno = 3367 (0xd27), region = 52  ;;  %s1869_s20 = sshll.u32 (!%p3031_p4), %s2785_s1, 3 }
  0x77   : > { %s336_s3 = scalar_lea.sflag (!%p3031_p4), [#allocation3], %s2785_s1  ;;  %s2791_s4 = scalar_lea.vmem (!%p3031_p4), [#allocation2], %s1869_s20 }
  0x7b   : > { %2531 = dma.done.wait (%p3032_p5), %s336_s3, 128  }
  0x7c   : > { %2533 = vsyncadd (%p3032_p5), %s336_s3, 4294967168  ;;  %p3033_p6 = scmp.eq.s32.totalorder %s2651_s11, 0 }
  0x7e   : > { %2535 = dma.done.wait (%p3033_p6), [#allocation6], 4096   ;;  %p3034_p10 = pmov %p3033_p6 }
  0x7f   : > { %p3035_p11 = pmov %p3033_p6 }
  0x80   : > { %2537 = vsyncadd (%p3034_p10), [#allocation6], 4294963200 }
  0x81   : > { %2539 = dma.done.wait (%p3035_p11), [#allocation9], 2080   ;;  %p3036_p1 = pmov %p3033_p6 }
  0x83   : > { %2541 = vsyncadd (%p3036_p1), [#allocation9], 4294965216  ;;  %p3037_p7 = pmov %p3036_p1 }
  0x84   : > { %p3038_p13 = pmov %p3036_p1 }
  0x85   : > { %2543 = dma.done.wait (%p3037_p7), [#allocation12], 2048  }
  0x86   : > { %2545 = vsyncadd (%p3038_p13), [#allocation12], 4294965248  ;;  %v2578_v0 = vmov 0   ;;  %v2230_v1 = vld [vmem:[#allocation5 + $0xac] ss:$12 sps:$4 sm:$0xff]   ;;  %v2579_v19 = vmov 0.0   ;;  %v435_v20 = vlaneseq }
  0x87   : > { %610 = vmatprep.mubr.bf16.mxu0 %v2578_v0  ;;  %v2232_v2 = vld [vmem:[#allocation5 + $0xa8] ss:$12 sps:$4 sm:$0xff]   ;;  %578 = vmatprep.subr.bf16.mxu0 %v2230_v1  ;;  %v2235_v4 = vld [vmem:[#allocation5 + $0x90] ss:$12 sps:$4 sm:$0xff]   ;;  %v2238_v6 = vld [vmem:[#allocation5 + $0x78] ss:$12 sps:$4 sm:$0xff]  }
  0x88   : > { %v2233_v3 = vld [vmem:[#allocation5 + $0x94] ss:$12 sps:$4 sm:$0xff]   ;;  %579 = vmatpush1.bf16.msra.mxu0 %v2232_v2  ;;  %v2236_v5 = vld [vmem:[#allocation5 + $0x7c] ss:$12 sps:$4 sm:$0xff]   ;;  %v2239_v7 = vld [vmem:[#allocation5 + $0x64] ss:$12 sps:$4 sm:$0xff]   ;;  %2021 = vmatprep.subr.bf16.mxu1 %v2579_v19 }
  0x89   : > { %580 = vmatprep.subr.bf16.mxu0 %v2233_v3  ;;  %v2241_v8 = vld [vmem:[#allocation5 + $0x60] ss:$12 sps:$4 sm:$0xff]   ;;  %v2244_v10 = vld [vmem:[#allocation5 + $0x48] ss:$12 sps:$4 sm:$0xff]   ;;  %v2247_v12 = vld [vmem:[#allocation5 + $0x30] ss:$12 sps:$4 sm:$0xff]  }
  0x8a   : > { %v2242_v9 = vld [vmem:[#allocation5 + $0x4c] ss:$12 sps:$4 sm:$0xff]   ;;  %v2245_v11 = vld [vmem:[#allocation5 + $0x34] ss:$12 sps:$4 sm:$0xff]   ;;  %v2248_v13 = vld [vmem:[#allocation5 + $0x1c] ss:$12 sps:$4 sm:$0xff]  }
  0x8b   : > { %v2250_v14 = vld [vmem:[#allocation5 + $0x18] ss:$12 sps:$4 sm:$0xff]   ;;  %v2253_v16 = vld [vmem:[#allocation5] ss:$12 sps:$4 sm:$0xff]   ;;  %vm2580_vm0 = vmmov 0   ;;  %v2821_v21 = vshrl.u32 %v435_v20, 7 }
  0x8c   : > { %581 = vmatpush1.bf16.msra.mxu0 %v2235_v4  ;;  %v2251_v15 = vld [vmem:[#allocation5 + $0x4] ss:$12 sps:$4 sm:$0xff]   ;;  %2037 = vmatprep.mubr.msk.bf16.mxu1 %vm2580_vm0, %v2579_v19  ;;  %vm662_vm1 = vcmask 261120   ;;  %s2581_s17 = smov 96   ;;  %v2256_v38 = vld [vmem:[#allocation5 + $0x80] ss:$12 sps:$4 sm:$0xff]  }
  0x8d   : > { %582 = vmatprep.subr.bf16.mxu0 %v2236_v5  ;;  %v2811_v17 = vld [vmem:[%s2791_s4] sm:$0xff]  ;;  %v441_v22 = vsub.s32 1, %v2821_v21  ;;  %v437_v23 = vsub.s32 0, %v2821_v21  ;;  %v2260_v42 = vld [vmem:[#allocation5 + $0x20] ss:$12 sps:$4 sm:$0xff]   ;;  %vm709_vm2 = vcmask 64512  }
  0x8e   : > { %v400_v18 = vpack.c.bf16 %v2811_v17, %v2811_v17  ;;  %v2828_v24 = vld [vmem:[%s3006_s2] sm:$0x7]  ;;  %v2255_v37 = vld [vmem:[#allocation5 + $0x98] ss:$12 sps:$4 sm:$0xff]   ;;  %v2257_v39 = vld [vmem:[#allocation5 + $0x68] ss:$12 sps:$4 sm:$0xff]  }
  0x8f   : > { %v442_v25 = vrot.slane %v2828_v24, %v441_v22  ;;  %v438_v27 = vrot.slane %v2828_v24, %v437_v23  ;;  %v2254_v36 = vld [vmem:[#allocation5 + $0xb0] ss:$12 sps:$4 sm:$0xff]   ;;  %v2259_v41 = vld [vmem:[#allocation5 + $0x38] ss:$12 sps:$4 sm:$0xff]   ;;  %v2261_v43 = vld [vmem:[#allocation5 + $0x8] ss:$12 sps:$4 sm:$0xff]  }
  0x90   : > { %583 = vmatpush1.bf16.msra.mxu0 %v2238_v6  ;;  %2022 = vmatpush3.bf16.msra.mxu1 %v2254_v36  ;;  %v2258_v40 = vld [vmem:[#allocation5 + $0x50] ss:$12 sps:$4 sm:$0xff]   ;;  %v445_v3 = vsub.s32 2, %v2821_v21  ;;  %vm725_vm3 = vcmask 1043456   ;;  %s2582_s13 = smov 64   ;;  %s2583_s15 = smov 32  }
  0x91   : > { %584 = vmatprep.subr.bf16.mxu0 %v2239_v7  ;;  %2023 = vmatprep.subr.bf16.mxu1 %v2579_v19  ;;  %v2265_v20 = vld [vmem:[#allocation7 + $0x10] sm:$0xff]   ;;  %s1727_s24 = scalar_lea.sflag [#allocation4], %s2785_s1  ;;  %p3039_p2 = scmp.ne.s32.totalorder %s3028_s16, 0 }
  0x92   : > { %v446_v4 = vrot.slane %v2828_v24, %v445_v3  ;;  %v1955_v21 = vld [vmem:[%s3011_s7 + $0x1] ss:$0 sm:$0xff]  ;;  %s2584_s19 = smov [#allocation13]  }
  0x93   : > { %s2492_s3 = sshll.u32 %s2584_s19, 4  ;;  %s2493_s3 = int_to_ptr.vmem [resolvable:$false] %s2492_s3 }
  0x94   : > { %585 = vmatpush1.bf16.msra.mxu0 %v2241_v8  ;;  %2024 = vmatpush3.bf16.msra.mxu1 %v2255_v37 }
  0x95   : > { %586 = vmatprep.subr.bf16.mxu0 %v2242_v9  ;;  %2025 = vmatprep.subr.bf16.mxu1 %v2579_v19 }
  0x98   : > { %587 = vmatpush1.bf16.msra.mxu0 %v2244_v10  ;;  %2026 = vmatpush3.bf16.msra.mxu1 %v2256_v38 }
  0x99   : > { %588 = vmatprep.subr.bf16.mxu0 %v2245_v11  ;;  %2027 = vmatprep.subr.bf16.mxu1 %v2579_v19 }
  0x9c   : > { %589 = vmatpush1.bf16.msra.mxu0 %v2247_v12  ;;  %2028 = vmatpush3.bf16.msra.mxu1 %v2257_v39 }
  0x9d   : > { %590 = vmatprep.subr.bf16.mxu0 %v2248_v13  ;;  %2029 = vmatprep.subr.bf16.mxu1 %v2579_v19 }
  0xa0   : > { %591 = vmatpush1.bf16.msra.mxu0 %v2250_v14  ;;  %2030 = vmatpush3.bf16.msra.mxu1 %v2258_v40 }
  0xa1   : > { %592 = vmatprep.subr.bf16.mxu0 %v2251_v15  ;;  %2031 = vmatprep.subr.bf16.mxu1 %v2579_v19 }
  0xa4   : > { %593 = vmatpush1.bf16.msra.mxu0 %v2253_v16  ;;  %2032 = vmatpush3.bf16.msra.mxu1 %v2259_v41 }
  0xa5   : > { %2041 = vmatprep.subr.bf16.mxu0 %v2579_v19  ;;  %2033 = vmatprep.subr.bf16.mxu1 %v2579_v19 }
  0xa7   : > { %611 = vmatmul.mubr.bf16.vlgmr.msra.gmra.mxu0 %v400_v18 }
  0xa8   : > { %2043 = vmatprep.mubr.msk.bf16.mxu0 %vm2580_vm0, %v2579_v19  ;;  %2034 = vmatpush3.bf16.msra.mxu1 %v2260_v42 }
  0xa9   : > { %2035 = vmatprep.subr.bf16.mxu1 %v2579_v19 }
  0xac   : > { %2036 = vmatpush3.bf16.msra.mxu1 %v2261_v43 }
  0xad   : > { %2047 = vmatprep.subr.bf16.mxu1 %v2579_v19 }
  0xaf   : > { %2038 = vmatmul.mubr.bf16.vlgmr.msra.gmra.mxu1 %v400_v18  ;;  %v2264_v18 = vld [vmem:[#allocation7 + $0x18] sm:$0xff]  }
  0xb0   : > { %2049 = vmatprep.mubr.msk.bf16.mxu1 %vm2580_vm0, %v2579_v19 }
 0x167   : > { %v612_v26 = vpop.f32.mrf.mxu0 }
 0x168   : > { %v613_v31 = vadd.f32 %v612_v26, %v438_v27 }
 0x169   : > { %v614_v28 = vpop.f32.mrf.mxu0 }
 0x16a   : > { %v615_v29 = vadd.f32 %v614_v28, %v442_v25  ;;  %v2842_v35 = vpack.c.bf16 %v613_v31, %v613_v31  ;;  %v2263_v31 = vld [vmem:[#allocation7] sm:$0xff]  }
 0x16b   : > { %v616_v30 = vpop.f32.mrf.mxu0 }
 0x16c   : > { %v2836_v32 = vpack.c.bf16 %v615_v29, %v615_v29  ;;  %v2262_v29 = vld [vmem:[#allocation7 + $0x8] sm:$0xff]  }
 0x16d   : > { %v617_v33 = vpop.f32.mrf.mxu0 }
 0x16e   : > { %778 = vrot.lane.b32.xlu0 %v2836_v32, %s2581_s17  ;;  %v667_v34 = vsel %vm662_vm1, %v2836_v32, 0 }
 0x16f   : > { %2042 = vmatpush3.bf16.xpose.msra.mxu0 %v667_v34  ;;  %v653_v60 = vpop.f32.mrf.mxu1 }
 0x170   : > { %2053 = vmatprep.subr.bf16.mxu0 %v2579_v19  ;;  %v654_v5 = vadd.f32 %v653_v60, %v446_v4  ;;  %v2266_v4 = vld [vmem:[#allocation7 + $0x28] sm:$0xff]  }
 0x171   : > { %v2039_v61 = vpop.f32.mrf.mxu1 }
 0x172   : > { %775 = vrot.lane.b32.xlu0 %v2842_v35, %s2581_s17  ;;  %v2871_v6 = vpack.c.bf16 %v654_v5, %v654_v5 }
 0x173   : > { %v656_v62 = vpop.f32.mrf.mxu1 }
 0x174   : > { %v727_v7 = vsel %vm725_vm3, %v2871_v6, 0 }
 0x175   : > { %v2040_v63 = vpop.f32.mrf.mxu1  ;;  %2048 = vmatpush3.bf16.msra.mxu1 %v727_v7 }
 0x176   : > { %2044 = vmatmul.mubr.msk.bf16.vlgmr.msra.gmra.mxu0 %vm662_vm1, %v2842_v35  ;;  %2059 = vmatprep.subr.bf16.mxu1 %v2579_v19 }
 0x177   : > { %2055 = vmatprep.mubr.msk.bf16.mxu0 %vm2580_vm0, %v2579_v19 }
 0x1e0   : > { %v779_v44 = vpop.permute.xlu0 %778 }
 0x1e1   : > { %v784_v45 = vsel %vm662_vm1, %v779_v44, 0 }
 0x1e2   : > { %2054 = vmatpush3.bf16.xpose.msra.mxu0 %v784_v45 }
 0x1e3   : > { %2065 = vmatprep.subr.bf16.mxu0 %v2579_v19 }
 0x1e4   : > { %v776_v46 = vpop.permute.xlu0 %775 }
 0x1e9   : > { %2056 = vmatmul.mubr.msk.bf16.vlgmr.msra.gmra.mxu0 %vm662_vm1, %v776_v46 }
 0x1ea   : > { %2069 = vmatprep.mubr.msk.bf16.mxu0 %vm2580_vm0, %v2579_v19  ;;  %2066 = vmatpush3.bf16.msra.mxu0 %v2264_v18 }
 0x1eb   : > { %2067 = vmatprep.subr.bf16.mxu0 %v2579_v19 }
 0x1ee   : > { %2068 = vmatpush3.bf16.msra.mxu0 %v2265_v20 }
 0x1ef   : > { %2081 = vmatprep.subr.bf16.mxu0 %v2579_v19 }
 0x236   : > { %v703_v47 = vpop.f32.mrf.mxu0 }
 0x237   : > { %v710_v48 = vsel %vm709_vm2, %v703_v47, -inf }
 0x238   : > { %711 = vmax.xlane.f32.xlu1 %v710_v48  ;;  %v2045_v49 = vpop.f32.mrf.mxu0 }
 0x23a   : > { %v706_v50 = vpop.f32.mrf.mxu0 }
 0x23c   : > { %v2046_v51 = vpop.f32.mrf.mxu0 }
 0x2a9   : > { %v820_v52 = vpop.f32.mrf.mxu0 }
 0x2aa   : > { %v826_v53 = vsel %vm709_vm2, %v820_v52, -inf }
 0x2ab   : > { %827 = vmax.xlane.f32.xlu1 %v826_v53  ;;  %v2057_v54 = vpop.f32.mrf.mxu0 }
 0x2ad   : > { %v823_v55 = vpop.f32.mrf.mxu0 }
 0x2af   : > { %v2058_v56 = vpop.f32.mrf.mxu0 }
 0x2c1   : > { %v712_v57 = vpop.xlane.xlu1 %711 }
 0x2c2   : > { %v713_v58 = vsub.f32 %v703_v47, %v712_v57 }
 0x2c4   : > { %v714_v59 = vmul.f32 1.442695, %v713_v58 }
 0x2c6   : > { %2310 = vpow2.f32 %v714_v59 }
 0x2d3   : > { %v2311_v1 = vpop.eup %2310 }
 0x2d4   : > { %v716_v2 = vsel %vm709_vm2, %v2311_v1, 0.0 }
 0x2d5   : > { %717 = vadd.xlane.f32.xlu0 %v716_v2 }
 0x2eb   : > { %1064 = vrot.lane.b32.xlu0 %v2871_v6, %s2582_s13 }
 0x334   : > { %v828_v8 = vpop.xlane.xlu1 %827 }
 0x335   : > { %v829_v9 = vsub.f32 %v820_v52, %v828_v8 }
 0x337   : > { %v830_v10 = vmul.f32 1.442695, %v829_v9 }
 0x339   : > { %2312 = vpow2.f32 %v830_v10 }
 0x346   : > { %v2313_v11 = vpop.eup %2312 }
 0x347   : > { %v832_v12 = vsel %vm709_vm2, %v2313_v11, 0.0 }
 0x348   : > { %833 = vadd.xlane.f32.xlu1 %v832_v12 }
 0x359   : > { %839 = vrot.lane.b32.xlu1 %v2871_v6, %s2581_s17 }
 0x35d   : > { %1004 = vrot.lane.b32.xlu1 %v2836_v32, %s2582_s13 }
 0x35e   : > { %v718_v13 = vpop.xlane.xlu0 %717 }
 0x35f   : > { %2314 = vrcp.f32 %v718_v13 }
 0x361   : > { %1002 = vrot.lane.b32.xlu1 %v2842_v35, %s2582_s13  ;;  %s1959_s13 = sshll.u32 %s2651_s11, 7  ;;  %s2494_s11 = scalar_lea.vmem %s2493_s3, 256 }
 0x362   : > { %v1065_v33 = vpop.permute.xlu0 %1064  ;;  %s1738_s9 = scalar_lea.hbm %s3012_s8, %s1959_s13 }
 0x363   : > { %v1070_v38 = vsel %vm725_vm3, %v1065_v33, 0 }
 0x36c   : > { %v2315_v14 = vpop.eup %2314 }
 0x36d   : > { %v720_v15 = vmul.f32 %v2315_v14, %v2311_v1 }
 0x36f   : > { %v721_v16 = vpack.c.bf16 %v720_v15, %v720_v15 }
 0x371   : > { %2050 = vmatmul.mubr.msk.bf16.vlgmr.msra.gmra.mxu1 %vm709_vm2, %v721_v16 }
 0x372   : > { %2061 = vmatprep.mubr.msk.bf16.mxu1 %vm2580_vm0, %v2579_v19 }
 0x3d1   : > { %v834_v24 = vpop.xlane.xlu1 %833 }
 0x3d2   : > { %2316 = vrcp.f32 %v834_v24 }
 0x3d5   : > { %v840_v25 = vpop.permute.xlu1 %839 }
 0x3d6   : > { %v845_v26 = vsel %vm725_vm3, %v840_v25, 0 }
 0x3d7   : > { %2060 = vmatpush3.bf16.msra.mxu1 %v845_v26 }
 0x3d8   : > { %2073 = vmatprep.subr.bf16.mxu1 %v2579_v19 }
 0x3d9   : > { %v1005_v41 = vpop.permute.xlu1 %1004 }
 0x3da   : > { %v1010_v45 = vsel %vm662_vm1, %v1005_v41, 0 }
 0x3dd   : > { %v1003_v48 = vpop.permute.xlu1 %1002 }
 0x3df   : > { %v2317_v27 = vpop.eup %2316 }
 0x3e0   : > { %v836_v28 = vmul.f32 %v2317_v27, %v2313_v11 }
 0x3e2   : > { %v837_v30 = vpack.c.bf16 %v836_v28, %v836_v28 }
 0x3e4   : > { %2062 = vmatmul.mubr.msk.bf16.vlgmr.msra.gmra.mxu1 %vm709_vm2, %v837_v30 }
 0x3e5   : > { %2074 = vmatpush3.bf16.msra.mxu1 %v2262_v29  ;;  %2077 = vmatprep.mubr.msk.bf16.mxu1 %vm2580_vm0, %v2579_v19 }
 0x3e6   : > { %2075 = vmatprep.subr.bf16.mxu1 %v2579_v19 }
 0x3e9   : > { %2076 = vmatpush3.bf16.msra.mxu1 %v2263_v31 }
 0x3ea   : > { %2087 = vmatprep.subr.bf16.mxu1 %v2579_v19 }
 0x431   : > { %v763_v34 = vpop.f32.mrf.mxu1 }
 0x432   : > { %v769_v36 = vpack.c.bf16 %v763_v34, %v763_v34 }
 0x433   : > { %v2051_v37 = vpop.f32.mrf.mxu1 }
 0x434   : > { %2078 = vmatmul.mubr.msk.bf16.vlgmr.msra.gmra.mxu1 %vm662_vm1, %v769_v36  ;;  %v2268_v36 = vld [vmem:[#allocation7 + $0x38] sm:$0xff]  }
 0x435   : > { %2088 = vmatpush3.bf16.msra.mxu1 %v1070_v38  ;;  %v766_v39 = vpop.f32.mrf.mxu1  ;;  %2089 = vmatprep.mubr.msk.bf16.mxu1 %vm2580_vm0, %v2579_v19 }
 0x436   : > { %2101 = vmatprep.subr.bf16.mxu1 %v2579_v19 }
 0x437   : > { %v2052_v40 = vpop.f32.mrf.mxu1 }
 0x4a4   : > { %v881_v42 = vpop.f32.mrf.mxu1 }
 0x4a5   : > { %v887_v43 = vpack.c.bf16 %v881_v42, %v881_v42 }
 0x4a6   : > { %v2063_v44 = vpop.f32.mrf.mxu1 }
 0x4a7   : > { %2070 = vmatmul.mubr.msk.bf16.vlgmr.msra.gmra.mxu0 %vm662_vm1, %v887_v43 }
 0x4a8   : > { %2082 = vmatpush3.bf16.xpose.msra.mxu0 %v1010_v45  ;;  %v884_v46 = vpop.f32.mrf.mxu1  ;;  %2083 = vmatprep.mubr.msk.bf16.mxu0 %vm2580_vm0, %v2579_v19 }
 0x4a9   : > { %2093 = vmatprep.subr.bf16.mxu0 %v2579_v19  ;;  %v2269_v46 = vld [vmem:[#allocation7 + $0x30] sm:$0xff]  }
 0x4aa   : > { %v2064_v47 = vpop.f32.mrf.mxu1 }
 0x4af   : > { %2084 = vmatmul.mubr.msk.bf16.vlgmr.msra.gmra.mxu0 %vm662_vm1, %v1003_v48 }
 0x4b0   : > { %2097 = vmatprep.mubr.msk.bf16.mxu0 %vm2580_vm0, %v2579_v19  ;;  %2094 = vmatpush3.bf16.msra.mxu0 %v2266_v4  ;;  %v2282_v4 = vld [vmem:[#allocation8 + $0x30] ss:$8 sps:$4 sm:$0xff]  }
 0x4b1   : > { %2095 = vmatprep.subr.bf16.mxu0 %v2579_v19 }
 0x4f4   : > { %v2907_v49 = vpop.f32.mrf.mxu1 }
 0x4f6   : > { %v2079_v50 = vpop.f32.mrf.mxu1 }
 0x4f8   : > { %v999_v51 = vpop.f32.mrf.mxu1 }
 0x4f9   : > { %v2270_v51 = vld [vmem:[#allocation8 + $0x70] ss:$8 sps:$4 sm:$0xff]  }
 0x4fa   : > { %v2080_v52 = vpop.f32.mrf.mxu1 }
 0x4fb   : > { %v2272_v52 = vld [vmem:[#allocation8 + $0x74] ss:$8 sps:$4 sm:$0xff]  }
 0x567   : > { %v941_v53 = vpop.f32.mrf.mxu0 }
 0x568   : > { %v997_v33 = vadd.f32 %v2907_v49, %v941_v53 }
 0x569   : > { %v2071_v54 = vpop.f32.mrf.mxu0 }
 0x56b   : > { %v944_v55 = vpop.f32.mrf.mxu0 }
 0x56d   : > { %v2072_v56 = vpop.f32.mrf.mxu0 }
 0x56f   : > { %v1046_v57 = vpop.f32.mrf.mxu0 }
 0x570   : > { %v1052_v58 = vsel %vm709_vm2, %v1046_v57, -inf }
 0x571   : > { %1053 = vmax.xlane.f32.xlu1 %v1052_v58  ;;  %v2085_v59 = vpop.f32.mrf.mxu0 }
 0x573   : > { %v1049_v60 = vpop.f32.mrf.mxu0 }
 0x575   : > { %v2086_v61 = vpop.f32.mrf.mxu0 }
 0x576   : > { %v2275_v61 = vld [vmem:[#allocation8 + $0x64] ss:$8 sps:$4 sm:$0xff]  }
 0x5fa   : > { %v1054_v62 = vpop.xlane.xlu1 %1053 }
 0x5fb   : > { %v1055_v63 = vsub.f32 %v1046_v57, %v1054_v62  ;;  %v2273_v62 = vld [vmem:[#allocation8 + $0x60] ss:$8 sps:$4 sm:$0xff]  }
 0x5fd   : > { %v1056_v1 = vmul.f32 1.442695, %v1055_v63  ;;  %v2278_v63 = vld [vmem:[#allocation8 + $0x54] ss:$8 sps:$4 sm:$0xff]  }
 0x5ff   : > { %2318 = vpow2.f32 %v1056_v1  ;;  %v2276_v1 = vld [vmem:[#allocation8 + $0x50] ss:$8 sps:$4 sm:$0xff]  }
 0x60c   : > { %v2319_v2 = vpop.eup %2318 }
 0x60d   : > { %v1058_v3 = vsel %vm709_vm2, %v2319_v2, 0.0 }
 0x60e   : > { %1059 = vadd.xlane.f32.xlu0 %v1058_v3  ;;  %v2284_v3 = vld [vmem:[#allocation8 + $0x34] ss:$8 sps:$4 sm:$0xff]  }
 0x624   : > { %1175 = vrot.lane.b32.xlu0 %v2836_v32, %s2583_s15 }
 0x628   : > { %1173 = vrot.lane.b32.xlu0 %v2842_v35, %s2583_s15  ;;  %v2267_v35 = vld [vmem:[#allocation7 + $0x20] sm:$0xff]  }
 0x629   : > { %2096 = vmatpush3.bf16.msra.mxu0 %v2267_v35  ;;  %v2295_v35 = vld [vmem:[#allocation11 + $0x38] sm:$0xff]  }
 0x62a   : > { %2107 = vmatprep.subr.bf16.mxu0 %v2579_v19 }
 0x697   : > { %v1060_v5 = vpop.xlane.xlu0 %1059 }
 0x698   : > { %2320 = vrcp.f32 %v1060_v5  ;;  %v2287_v5 = vld [vmem:[#allocation8 + $0x24] ss:$8 sps:$4 sm:$0xff]  }
 0x69b   : > { %v1176_v9 = vpop.permute.xlu0 %1175 }
 0x69c   : > { %v1181_v11 = vsel %vm662_vm1, %v1176_v9, 0  ;;  %v2288_v9 = vld [vmem:[#allocation8 + $0x10] ss:$8 sps:$4 sm:$0xff]  }
 0x69f   : > { %v1174_v32 = vpop.permute.xlu0 %1173 }
 0x6a5   : > { %v2321_v7 = vpop.eup %2320 }
 0x6a6   : > { %v1062_v8 = vmul.f32 %v2321_v7, %v2319_v2  ;;  %v2279_v2 = vld [vmem:[#allocation8 + $0x40] ss:$8 sps:$4 sm:$0xff]  }
 0x6a7   : > { %v2285_v7 = vld [vmem:[#allocation8 + $0x20] ss:$8 sps:$4 sm:$0xff]  }
 0x6a8   : > { %v1063_v10 = vpack.c.bf16 %v1062_v8, %v1062_v8  ;;  %v2290_v8 = vld [vmem:[#allocation8 + $0x14] ss:$8 sps:$4 sm:$0xff]  }
 0x6aa   : > { %2090 = vmatmul.mubr.msk.bf16.vlgmr.msra.gmra.mxu1 %vm709_vm2, %v1063_v10  ;;  %v2293_v10 = vld [vmem:[#allocation8 + $0x4] ss:$8 sps:$4 sm:$0xff]  }
 0x6ab   : > { %2102 = vmatpush3.bf16.xpose.msra.mxu1 %v1181_v11  ;;  %2103 = vmatprep.mubr.msk.bf16.mxu1 %vm2580_vm0, %v2579_v19  ;;  %v2291_v11 = vld [vmem:[#allocation8] ss:$8 sps:$4 sm:$0xff]  }
 0x6ac   : > { %2113 = vmatprep.subr.bf16.mxu1 %v2579_v19 }
 0x6b2   : > { %2104 = vmatmul.mubr.msk.bf16.vlgmr.msra.gmra.mxu1 %vm662_vm1, %v1174_v32  ;;  %v2294_v32 = vld [vmem:[#allocation11 + $0x78] sm:$0xff]  }
 0x6b3   : > { %2117 = vmatprep.mubr.msk.bf16.mxu1 %vm2580_vm0, %v2579_v19  ;;  %2114 = vmatpush3.bf16.msra.mxu1 %v2268_v36 }
 0x6b4   : > { %2115 = vmatprep.subr.bf16.mxu1 %v2579_v19 }
 0x6b7   : > { %2116 = vmatpush3.bf16.msra.mxu1 %v2269_v46  ;;  %v2309_v46 = vld [vmem:[#allocation11] sm:$0xff]  }
 0x6b8   : > { %1999 = vmatprep.subr.bf16.mxu1 %v2294_v32  ;;  %v1957_v32 = vld [vmem:[%s3011_s7 + $0x5] ss:$0 sm:$0xff] }
 0x76a   : > { %v1106_v12 = vpop.f32.mrf.mxu1 }
 0x76b   : > { %v1112_v13 = vpack.c.bf16 %v1106_v12, %v1106_v12  ;;  %v2296_v12 = vld [vmem:[#allocation11 + $0x70] sm:$0xff]  }
 0x76c   : > { %v2091_v14 = vpop.f32.mrf.mxu1 }
 0x76d   : > { %2098 = vmatmul.mubr.msk.bf16.vlgmr.msra.gmra.mxu0 %vm662_vm1, %v1112_v13  ;;  %v2297_v13 = vld [vmem:[#allocation11 + $0x30] sm:$0xff]   ;;  %v2298_v14 = vld [vmem:[#allocation11 + $0x68] sm:$0xff]  }
 0x76e   : > { %v1109_v15 = vpop.f32.mrf.mxu1  ;;  %2109 = vmatprep.mubr.msk.bf16.mxu0 %vm2580_vm0, %v2579_v19 }
 0x76f   : > { %v2299_v15 = vld [vmem:[#allocation11 + $0x28] sm:$0xff]  }
 0x770   : > { %v2092_v16 = vpop.f32.mrf.mxu1 }
 0x771   : > { %v2300_v16 = vld [vmem:[#allocation11 + $0x60] sm:$0xff]  }
 0x772   : > { %v1217_v18 = vpop.f32.mrf.mxu1 }
 0x773   : > { %v1223_v20 = vsel %vm709_vm2, %v1217_v18, -inf }
 0x774   : > { %1224 = vmax.xlane.f32.xlu0 %v1223_v20  ;;  %v2105_v24 = vpop.f32.mrf.mxu1  ;;  %v2302_v20 = vld [vmem:[#allocation11 + $0x58] sm:$0xff]  }
 0x775   : > { %v2303_v24 = vld [vmem:[#allocation11 + $0x18] sm:$0xff]  }
 0x776   : > { %v1220_v25 = vpop.f32.mrf.mxu1 }
 0x777   : > { %v2304_v25 = vld [vmem:[#allocation11 + $0x50] sm:$0xff]  }
 0x778   : > { %v2106_v26 = vpop.f32.mrf.mxu1 }
 0x779   : > { %v2305_v26 = vld [vmem:[#allocation11 + $0x10] sm:$0xff]  }
 0x7fd   : > { %v1225_v27 = vpop.xlane.xlu0 %1224 }
 0x7fe   : > { %v1226_v28 = vsub.f32 %v1217_v18, %v1225_v27  ;;  %v2301_v18 = vld [vmem:[#allocation11 + $0x20] sm:$0xff]  }
 0x800   : > { %v1227_v29 = vmul.f32 1.442695, %v1226_v28 }
 0x802   : > { %2322 = vpow2.f32 %v1227_v29 }
 0x80f   : > { %v2323_v30 = vpop.eup %2322 }
 0x810   : > { %v1229_v31 = vsel %vm709_vm2, %v2323_v30, 0.0 }
 0x811   : > { %1230 = vadd.xlane.f32.xlu1 %v1229_v31 }
 0x822   : > { %1235 = vrot.lane.b32.xlu1 %v2871_v6, %s2583_s15  ;;  %s391_s15 = scalar_lea.vmem [#allocation13], %s1869_s20 }
 0x823   : > { %s1740_s14 = sshll.u32 %s391_s15, 4  ;;  %s1741_s14 = int_to_ptr.vmem [resolvable:$true] %s1740_s14 }
 0x824   : > { %s2488_s10 = scalar_lea.vmem %s1741_s14, 128  ;;  %p2495_p12 = scmp.lt.s32.totalorder %s1741_s14, %s2493_s3 }
 0x825   : > { %p2489_p0 = scmp.ne.s32.totalorder %s1741_s14, %s2488_s10  ;;  %p2496_p3 = scmp.lt.s32.totalorder %s2494_s11, %s2488_s10 }
 0x827   : > { %p2490_p8 = pnand %p2489_p0, %p3039_p2  ;;  %p2497_p4 = por %p2496_p3, %p2495_p12 }
 0x829   : > { %p2491_p9 = pneg %p2490_p8 }
 0x82b   : > { %p2498_p5 = pnand %p2497_p4, %p2491_p9 }
 0x82d   : > { %v1166_v34 = vpop.f32.mrf.mxu0 }
 0x82e   : > { %v1172_v37 = vadd.f32 %v1166_v34, %v997_v33 }
 0x82f   : > { %v2099_v38 = vpop.f32.mrf.mxu0 }
 0x830   : > { %v1921_v38 = vld [vmem:[%s3011_s7 + $0x2] ss:$0 sm:$0xff] }
 0x831   : > { %v1169_v39 = vpop.f32.mrf.mxu0 }
 0x833   : > { %v2100_v40 = vpop.f32.mrf.mxu0 }
 0x834   : > { %v1922_v40 = vld [vmem:[%s3011_s7 + $0x3] ss:$0 sm:$0xff] }
 0x89a   : > { %v1231_v41 = vpop.xlane.xlu1 %1230 }
 0x89b   : > { %2324 = vrcp.f32 %v1231_v41 }
 0x89e   : > { %v1236_v42 = vpop.permute.xlu1 %1235 }
 0x89f   : > { %v1241_v43 = vsel %vm725_vm3, %v1236_v42, 0 }
 0x8a0   : > { %2108 = vmatpush3.bf16.msra.mxu0 %v1241_v43 }
 0x8a1   : > { %1483 = vmatprep.subr.bf16.mxu0 %v2272_v52 }
 0x8a8   : > { %v2325_v44 = vpop.eup %2324 }
 0x8a9   : > { %v1233_v45 = vmul.f32 %v2325_v44, %v2323_v30  ;;  %v2306_v44 = vld [vmem:[#allocation11 + $0x48] sm:$0xff]  }
 0x8ab   : > { %v1234_v6 = vpack.c.bf16 %v1233_v45, %v1233_v45  ;;  %v2307_v45 = vld [vmem:[#allocation11 + $0x8] sm:$0xff]  }
 0x8ad   : > { %2110 = vmatmul.mubr.msk.bf16.vlgmr.msra.gmra.mxu0 %vm709_vm2, %v1234_v6  ;;  %v2308_v6 = vld [vmem:[#allocation11 + $0x40] sm:$0xff]  }
 0x8ae   : > { %1515 = vmatprep.mubr.bf16.mxu0 %v2578_v0  ;;  %1484 = vmatpush1.bf16.msra.mxu0 %v2270_v51  ;;  %v1920_v0 = vld [vmem:[%s3011_s7] ss:$0 sm:$0xff] }
 0x8af   : > { %1485 = vmatprep.subr.bf16.mxu0 %v2275_v61 }
 0x8b2   : > { %1486 = vmatpush1.bf16.msra.mxu0 %v2273_v62 }
 0x8b3   : > { %1487 = vmatprep.subr.bf16.mxu0 %v2278_v63 }
 0x8b6   : > { %1488 = vmatpush1.bf16.msra.mxu0 %v2276_v1 }
 0x96d   : > { %v1277_v47 = vpop.f32.mrf.mxu0 }
 0x96e   : > { %v1283_v48 = vpack.c.bf16 %v1277_v47, %v1277_v47  ;;  %v1391_v47 = vld [vmem:[#allocation10] sm:$0x3] }
 0x96f   : > { %v2111_v19 = vpop.f32.mrf.mxu0 }
 0x970   : > { %2118 = vmatmul.mubr.msk.bf16.vlgmr.msra.gmra.mxu1 %vm662_vm1, %v1283_v48  ;;  %v1396_v48 = vrot.slane %v1391_v47, %v437_v23  ;;  %v1400_v19 = vrot.slane %v1391_v47, %v441_v22 }
 0x971   : > { %v1280_v49 = vpop.f32.mrf.mxu0  ;;  %2000 = vmatpush3.bf16.msra.mxu1 %v2295_v35 }
 0x972   : > { %2001 = vmatprep.subr.bf16.mxu1 %v2296_v12 }
 0x973   : > { %v2112_v50 = vpop.f32.mrf.mxu0 }
 0x975   : > { %2002 = vmatpush3.bf16.msra.mxu1 %v2297_v13 }
 0x976   : > { %2003 = vmatprep.subr.bf16.mxu1 %v2298_v14 }
 0x979   : > { %2004 = vmatpush3.bf16.msra.mxu1 %v2299_v15 }
 0x97a   : > { %2005 = vmatprep.subr.bf16.mxu1 %v2300_v16 }
 0x97d   : > { %2006 = vmatpush3.bf16.msra.mxu1 %v2301_v18 }
 0x97e   : > { %2007 = vmatprep.subr.bf16.mxu1 %v2302_v20 }
 0x981   : > { %2008 = vmatpush3.bf16.msra.mxu1 %v2303_v24 }
 0x982   : > { %2009 = vmatprep.subr.bf16.mxu1 %v2304_v25 }
 0x985   : > { %2010 = vmatpush3.bf16.msra.mxu1 %v2305_v26 }
 0x986   : > { %2011 = vmatprep.subr.bf16.mxu1 %v2306_v44 }
 0x989   : > { %2012 = vmatpush3.bf16.msra.mxu1 %v2307_v45 }
 0x98a   : > { %2013 = vmatprep.subr.bf16.mxu1 %v2308_v6 }
 0x98d   : > { %2014 = vmatpush3.bf16.msra.mxu1 %v2309_v46 }
 0xa30   : > { %v1337_v53 = vpop.f32.mrf.mxu1 }
 0xa31   : > { %v1343_v54 = vadd.f32 %v1337_v53, %v1172_v37 }
 0xa32   : > { %v2119_v55 = vpop.f32.mrf.mxu1 }
 0xa33   : > { %v1344_v56 = vadd.f32 %v1343_v54, %v2811_v17  ;;  %v2281_v17 = vld [vmem:[#allocation8 + $0x44] ss:$8 sps:$4 sm:$0xff]  }
 0xa34   : > { %v1340_v57 = vpop.f32.mrf.mxu1  ;;  %1489 = vmatprep.subr.bf16.mxu0 %v2281_v17 }
 0xa35   : > { %v2942_v58 = vadd.f32 %v1920_v0, %v1344_v56  ;;  %1490 = vmatpush1.bf16.msra.mxu0 %v2279_v2 }
 0xa36   : > { %v2120_v59 = vpop.f32.mrf.mxu1  ;;  %1491 = vmatprep.subr.bf16.mxu0 %v2284_v3 }
 0xa37   : > { %1350 = vadd.xlane.f32.xlu1 %v2942_v58  ;;  %v1354_v60 = vmul.f32 %v2942_v58, %v2942_v58 }
 0xa39   : > { %1355 = vadd.xlane.f32.xlu0 %v1354_v60  ;;  %1492 = vmatpush1.bf16.msra.mxu0 %v2282_v4 }
 0xa3a   : > { %1493 = vmatprep.subr.bf16.mxu0 %v2287_v5 }
 0xa3d   : > { %1494 = vmatpush1.bf16.msra.mxu0 %v2285_v7 }
 0xa3e   : > { %1495 = vmatprep.subr.bf16.mxu0 %v2290_v8 }
 0xa41   : > { %1496 = vmatpush1.bf16.msra.mxu0 %v2288_v9 }
 0xa42   : > { %1497 = vmatprep.subr.bf16.mxu0 %v2293_v10  ;;  %v1956_v10 = vld [vmem:[%s3011_s7 + $0x4] ss:$0 sm:$0xff] }
 0xa45   : > { %1498 = vmatpush1.bf16.msra.mxu0 %v2291_v11 }
 0xac0   : > { %v1351_v27 = vpop.xlane.xlu1 %1350 }
 0xac1   : > { %v1353_v28 = vmul.f32 0.0078125, %v1351_v27 }
 0xac2   : > { %v1356_v29 = vpop.xlane.xlu0 %1355 }
 0xac3   : > { %v1359_v30 = vmul.f32 %v1353_v28, %v1353_v28  ;;  %v1357_v31 = vmul.f32 0.0078125, %v1356_v29  ;;  %v1358_v36 = vsub.f32 %v2942_v58, %v1353_v28 }
 0xac5   : > { %v1360_v33 = vsub.f32 %v1357_v31, %v1359_v30 }
 0xac7   : > { %v1361_v34 = vadd.f32 1e-05, %v1360_v33 }
 0xac9   : > { %2326 = vrsqrt.f32 %v1361_v34 }
 0xad6   : > { %v2327_v37 = vpop.eup %2326 }
 0xad7   : > { %v1363_v39 = vmul.f32 %v2327_v37, %v1358_v36 }
 0xad9   : > { %v1368_v41 = vmul.f32 %v1921_v38, %v1363_v39 }
 0xadb   : > { %v1373_v42 = vadd.f32 %v1922_v40, %v1368_v41 }
 0xadd   : > { %v1374_v43 = vpack.c.bf16 %v1373_v42, %v1373_v42 }
 0xadf   : > { %1516 = vmatmul.mubr.bf16.vlgmr.msra.gmra.mxu0 %v1374_v43 }
 0xb9f   : > { %v1517_v49 = vpop.f32.mrf.mxu0 }
 0xba0   : > { %v1518_v50 = vadd.f32 %v1517_v49, %v1396_v48 }
 0xba1   : > { %v1519_v51 = vpop.f32.mrf.mxu0 }
 0xba2   : > { %v1520_v52 = vadd.f32 %v1519_v51, %v1400_v19  ;;  %v1524_v53 = vmax.f32 %v1518_v50, 0.0 }
 0xba3   : > { %v1521_v54 = vpop.f32.mrf.mxu0 }
 0xba4   : > { %v1525_v55 = vmax.f32 %v1520_v52, 0.0  ;;  %v1526_v57 = vpack.c.bf16 %v1524_v53, %v1524_v53 }
 0xba5   : > { %v1522_v0 = vpop.f32.mrf.mxu0 }
 0xba6   : > { %v1527_v56 = vpack.c.bf16 %v1525_v55, %v1525_v55 }
 0xba8   : > { %1688 = vmatprep.mubr.bf16.mxu1 %v1527_v56 }
 0xba9   : > { %1689 = vmatmul.mubr.bf16.vlgmr.msra.gmra.mxu1 %v1526_v57 }
 0xc69   : > { %v2015_v58 = vpop.f32.mrf.mxu1 }
 0xc6b   : > { %v2016_v59 = vpop.f32.mrf.mxu1 }
 0xc6c   : > { %v2017_v60 = vadd.f32 %v2016_v59, %v2015_v58 }
 0xc6d   : > { %v2018_v61 = vpop.f32.mrf.mxu1 }
 0xc6e   : > { %v1696_v22 = vadd.f32 %v2017_v60, %v1373_v42 }
 0xc6f   : > { %v2019_v23 = vpop.f32.mrf.mxu1 }
 0xc70   : > { %v1701_v62 = vadd.f32 %v1955_v21, %v1696_v22 }
 0xc72   : > { %1702 = vadd.xlane.f32.xlu0 %v1701_v62  ;;  %v1705_v63 = vmul.f32 %v1701_v62, %v1701_v62 }
 0xc76   : > { %1706 = vadd.xlane.f32.xlu0 %v1705_v63 }
 0xcfb   : > { %v1703_v1 = vpop.xlane.xlu0 %1702 }
 0xcfc   : > { %v1704_v2 = vmul.f32 0.0078125, %v1703_v1 }
 0xcfe   : > { %v1710_v3 = vmul.f32 %v1704_v2, %v1704_v2  ;;  %v1709_v8 = vsub.f32 %v1701_v62, %v1704_v2 }
 0xcff   : > { %v1707_v17 = vpop.xlane.xlu0 %1706 }
 0xd00   : > { %v1708_v4 = vmul.f32 0.0078125, %v1707_v17 }
 0xd02   : > { %v1711_v5 = vsub.f32 %v1708_v4, %v1710_v3 }
 0xd04   : > { %v1712_v7 = vadd.f32 1e-05, %v1711_v5 }
 0xd06   : > { %2328 = vrsqrt.f32 %v1712_v7 }
 0xd13   : > { %v2329_v9 = vpop.eup %2328 }
 0xd14   : > { %v1714_v11 = vmul.f32 %v2329_v9, %v1709_v8 }
 0xd16   : > { %v1719_v35 = vmul.f32 %v1956_v10, %v1714_v11 }
 0xd18   : > { %v1724_v12 = vadd.f32 %v1957_v32, %v1719_v35 }
 0xd1a   : > { %1725 = vst [vmem:[%s391_s15] sm:$0xff] %v1724_v12 }
 0xd1b   : > { %2501 = shalt.err (!%p2498_p5)
}
 0xd1c   : > { %s2502_s20 = scalar_lea.hbm %s1738_s9, 128  ;;  %s2506_s12 = scalar_lea.hbm %s3012_s8, 256 }
 0xd1d   : > { %p2503_p6 = scmp.ne.s32.totalorder %s1738_s9, %s2502_s20  ;;  %p2507_p1 = scmp.lt.s32.totalorder %s1738_s9, %s3012_s8 }
 0xd1e   : > { %p2508_p7 = scmp.lt.s32.totalorder %s2506_s12, %s2502_s20 }
 0xd1f   : > { %p2504_p10 = pnand %p2503_p6, %p3039_p2 }
 0xd20   : > { %p2509_p13 = por %p2508_p7, %p2507_p1 }
 0xd21   : > { %p2505_p11 = pneg %p2504_p10 }
 0xd23   : > { %p2510_p0 = pnand %p2509_p13, %p2505_p11 }
 0xd25   : > { %2513 = shalt.err (!%p2510_p0)
}
 0xd26   : > { %2143 = dma.vmem_to_hbm [thread:$0]  (%p3039_p2), %s1741_s14, 128, %s1738_s9, %s1727_s24  }
 0xd27 PF: > { %s1752_s13 = sand.u32 1, %s2552_s27   ;;  %p3040_p8 = scmp.ne.s32.totalorder %s3029_s23, 0 }
 0xd28   : > { %p3041_p9 = scmp.ge.s32.totalorder %s2564_s30, 2  ;;  %s1753_s15 = scalar_lea.sflag [#allocation4], %s1752_s13 }
 0xd2a   : > { %p2166_p12 = pnand %p3041_p9, %p3040_p8 }
 0xd2c   : > { %p2167_p3 = pneg %p2166_p12 }
 0xd2e   : > { %2547 = dma.done.wait (%p2167_p3), %s1753_s15, 128  }
 0xd2f   : > { %2549 = vsyncadd (%p2167_p3), %s1753_s15, 4294967168  ;;  %p24_p4 = scmp.ge.s32.totalorder %s2728_s18, 4   ;;  %s3042_s27 = smov %s2556_s28 }
 0xd30   : > { %s3043_s28 = smov %s2560_s29  ;;  %s3044_s29 = smov %s2740_s21 }
 0xd31   : > { %s3045_s30 = smov %s2728_s18  ;;  %26 = sbr.rel (!%p24_p4) target bundleno = 12 (0xc), region = 117 }
 0xd36   :  { %1758 = vsyncpa [#allocation3], 1 }
 0xd37   :  { %1760 = vsyncpa [#allocation3 + $0x1], 1 }
 0xd38   :  { %1761 = vsyncpa [#allocation6], 1 }
 0xd39   :  { %1762 = vsyncpa [#allocation9], 1 }
 0xd3a   :  { %1763 = vsyncpa [#allocation12], 1 }
 0xd3b   :  { %1764 = vsyncpa [#allocation4], 1 }
 0xd3c   :  { %1766 = vsyncpa [#allocation4 + $0x1], 1 }

</bundles_post_ra>
